<compile_context>
chip_gen: v6e
topology: v6e:2x2x1
jax: 0.10.0
libtpu: 0.0.40
codegen_flags: <defaults>
</compile_context>

<pallas_src>
import jax
import jax.numpy as jnp
from jax import lax
from jax.experimental import pallas as pl
from jax.experimental.pallas import tpu as pltpu


def make_ae_kernel(activations):
    """Fused MLP kernel for a fixed (static) layer/activation structure.

    Intermediate activations live as (features, batch_tile): the batch occupies the 128-wide
    lane axis, so all elementwise ops and intermediate matmuls are lane-dense. The first layer
    consumes x in its natural (batch, in) layout (trans-B dot) and the last layer emits
    (batch, out) directly (TN dot against a pre-transposed weight), so the wrapper needs no
    transposes, pads, or slices.
    """
    n_layers = len(activations)

    def kernel(x_ref, *args):
        param_refs = args[: 2 * n_layers]
        out_ref = args[2 * n_layers]
        compute_dtype = x_ref.dtype

        h = None
        for i in range(n_layers):
            w = param_refs[2 * i][...]        # torch (out,in) layout, except last layer: (in,out)
            b = param_refs[2 * i + 1][...]    # f32; (out,1) for intermediate layers, (1,out) last
            last = (i == n_layers - 1)
            if i == 0 and last:
                # single-layer net: (batch,in) . (in,out) -> (batch,out)
                acc = lax.dot_general(x_ref[...], w, (((1,), (0,)), ((), ())),
                                      preferred_element_type=jnp.float32)
            elif i == 0:
                # (out,in) x (batch,in): contract features (trans-B) -> (out,batch); no host x.T
                acc = lax.dot_general(w, x_ref[...], (((1,), (1,)), ((), ())),
                                      preferred_element_type=jnp.float32)
            elif last:
                # (in,batch) x (in,out): contract dim0 of both (TN) -> (batch,out); no host y.T
                acc = lax.dot_general(h, w, (((0,), (0,)), ((), ())),
                                      preferred_element_type=jnp.float32)
            else:
                # (out,in) x (in,batch) -> (out,batch): lane-dense intermediate
                acc = lax.dot_general(w, h, (((1,), (0,)), ((), ())),
                                      preferred_element_type=jnp.float32)
            acc = acc + b                      # bias added on the f32 accumulator

            act = activations[i]
            if act == "relu":
                # f32 VPU max, then back to the storage dtype for the next MXU pass
                h = jnp.maximum(acc, 0.0).astype(compute_dtype)
            elif act == "sigmoid":
                # exp and reciprocal both ride the EUP slot; stays in f32 (v5e has no bf16 EUP)
                e = jnp.exp(-acc)
                h = pl.reciprocal(1.0 + e, approx=True)
            else:
                h = acc.astype(compute_dtype)
            # nn.Dropout(p=0.1) is identity at inference time.
            # TODO(synk): training-mode dropout (p=0.1) not implemented; inference semantics only.

        out_ref[...] = h.astype(out_ref.dtype)

    return kernel


def prepare_params(params, compute_dtype=jnp.float32):
    """One-time parameter prep (hoisted out of the per-call wrapper).

    params: list of (W, b) with W = (out_features, in_features) torch layout, b = (out_features,).
    Returns kernel-ready params: W cast to the MXU storage dtype (last layer stored transposed
    as (in, out)), biases as f32 columns (out,1) / row (1,out) for the last layer.
    """
    n = len(params)
    prepped = []
    for i, (w, b) in enumerate(params):
        last = (i == n - 1)
        w = jnp.asarray(w, compute_dtype)
        if last:
            w = w.T                                     # (in, out): enables the TN last-layer dot
        b = jnp.asarray(b, jnp.float32).reshape(-1)
        b = b.reshape(1, -1) if last else b.reshape(-1, 1)
        prepped.append((w, b))
    return prepped


def _default_batch_tile(B, dtype):
    """Fewest/largest steps on single-TC parts; grid >= 2 on dual-TC (v7x-class) parts."""
    cap = 1024 if jnp.dtype(dtype) == jnp.dtype(jnp.bfloat16) else 512
    tile = min(cap, 128 * pl.cdiv(B, 128))
    try:
        dual_tc = "v7" in jax.devices()[0].device_kind.lower()
    except Exception:
        dual_tc = False
    if dual_tc and B >= 2 * 128:
        tile = min(cap, 128 * pl.cdiv(B, 2 * 128))      # grid >= 2 so both TensorCores get work
    return tile


def autoencoder_forward(x, prepped_params, activations, *, batch_tile=None):
    """Fused autoencoder forward.

    x:              (B, input_size), f32 or bf16 (must match the prepared weight dtype)
    prepped_params: output of prepare_params
    Returns {'target': y} with y of shape (B, input_size) and dtype x.dtype.
    """
    B, in_size = x.shape
    n_layers = len(prepped_params)
    assert n_layers == len(activations)
    assert prepped_params[0][0].dtype == x.dtype, "prepare_params with the same dtype as x"
    out_size = prepped_params[-1][0].shape[1]           # last weight stored as (in, out)

    if batch_tile is None:
        batch_tile = _default_batch_tile(B, x.dtype)
    assert batch_tile % 128 == 0
    n_steps = pl.cdiv(B, batch_tile)                    # ragged last block handled by Pallas

    in_specs = [pl.BlockSpec((batch_tile, in_size), lambda i: (i, 0))]
    flat_params = []
    for (w, b) in prepped_params:
        # Constant index_maps: parameters stay VMEM-resident across grid steps (no re-fetch).
        in_specs.append(pl.BlockSpec(w.shape, lambda i: (0, 0)))
        in_specs.append(pl.BlockSpec(b.shape, lambda i: (0, 0)))
        flat_params += [w, b]
    out_spec = pl.BlockSpec((batch_tile, out_size), lambda i: (i, 0))

    # Advisory cost estimate so XLA can schedule/overlap the custom call.
    flops = 2 * B * sum(int(w.size) for w, _ in prepped_params)
    transcendentals = 2 * B * out_size                  # exp + approx-reciprocal of final sigmoid
    bytes_accessed = (x.size * x.dtype.itemsize
                      + sum(int(a.size) * a.dtype.itemsize for a in flat_params)
                      + B * out_size * x.dtype.itemsize)

    y = pl.pallas_call(
        make_ae_kernel(tuple(activations)),
        out_shape=jax.ShapeDtypeStruct((B, out_size), x.dtype),
        grid_spec=pltpu.PrefetchScalarGridSpec(
            num_scalar_prefetch=0,
            grid=(n_steps,),
            in_specs=in_specs,
            out_specs=out_spec,
        ),
        compiler_params=pltpu.CompilerParams(
            dimension_semantics=("parallel",)),
        cost_estimate=pl.CostEstimate(
            flops=flops,
            transcendentals=transcendentals,
            bytes_accessed=bytes_accessed),
    )(x, *flat_params)
    return {"target": y}


def build_autoencoder_params(key, encoder_layer_sizes, latent_size,
                             decoder_layer_sizes, input_size):
    """Deterministic synthetic init mirroring the torch module's layer structure."""
    dims, acts = [], []
    # Encoder MLP: Linear + ReLU (+ Dropout) per layer
    enc_in = [input_size] + encoder_layer_sizes[:-1]
    for i_sz, o_sz in zip(enc_in, encoder_layer_sizes):
        dims.append((i_sz, o_sz)); acts.append("relu")
    # Latent layer + ReLU
    dims.append((encoder_layer_sizes[-1], latent_size)); acts.append("relu")
    # Decoder MLP: Linear + ReLU (+ Dropout) per layer
    dec_in = [latent_size] + decoder_layer_sizes[:-1]
    for i_sz, o_sz in zip(dec_in, decoder_layer_sizes):
        dims.append((i_sz, o_sz)); acts.append("relu")
    # Final decoder Linear + Sigmoid
    dims.append((decoder_layer_sizes[-1], input_size)); acts.append("sigmoid")

    params = []
    for (i_sz, o_sz) in dims:
        key, kw, kb = jax.random.split(key, 3)
        bound = 1.0 / float(i_sz) ** 0.5               # torch Linear default-ish uniform bound
        w = jax.random.uniform(kw, (o_sz, i_sz), jnp.float32, -bound, bound)
        b = jax.random.uniform(kb, (o_sz,), jnp.float32, -bound, bound)
        params.append((w, b))
    return params, acts


def reference_forward(x, params, activations):
    h = x.astype(jnp.float32)
    for (w, b), act in zip(params, activations):
        h = h @ w.astype(jnp.float32).T + b
        if act == "relu":
            h = jnp.maximum(h, 0.0)
        elif act == "sigmoid":
            h = jax.nn.sigmoid(h)
    return {"target": h}


if __name__ == "__main__":
    # Small config consistent with Autoencoder(__init__):
    encoder_layer_sizes = [64, 32]
    latent_size = 16
    decoder_layer_sizes = [32, 64]
    input_size = 32
    batch = 256

    key = jax.random.PRNGKey(0)
    key, kx = jax.random.split(key)
    x = jax.random.normal(kx, (batch, input_size), jnp.float32)

    params, acts = build_autoencoder_params(
        key, encoder_layer_sizes, latent_size, decoder_layer_sizes, input_size)

    y_ref = reference_forward(x, params, acts)["target"]

    # f32 run (default batch_tile: single large step on v5e/v6e, grid of 2 on dual-TC parts).
    prepped_f32 = prepare_params(params, jnp.float32)
    out = autoencoder_forward(x, prepped_f32, acts)
    y = jax.block_until_ready(out["target"])
    assert y.shape == (batch, input_size)
    # Tolerance slightly looser than pure f32 because the final sigmoid uses the EUP
    # approximate reciprocal; everything else (MXU accumulation, ReLU) is exact f32.
    assert jnp.allclose(y, y_ref, atol=2e-3, rtol=2e-3), "f32 mismatch vs reference"

    # Ragged batch (B not a multiple of the tile): no host-side pad/slice needed.
    xr = x[:200]
    yr = jax.block_until_ready(autoencoder_forward(xr, prepped_f32, acts)["target"])
    assert yr.shape == (200, input_size)
    assert jnp.allclose(yr, y_ref[:200], atol=2e-3, rtol=2e-3), "ragged-batch mismatch"

    # bf16 MXU inputs with f32 accumulation (looser tolerance for low-precision inputs).
    prepped_bf16 = prepare_params(params, jnp.bfloat16)
    out_bf16 = autoencoder_forward(x.astype(jnp.bfloat16), prepped_bf16, acts)
    y_bf16 = jax.block_until_ready(out_bf16["target"]).astype(jnp.float32)
    assert jnp.allclose(y_bf16, y_ref, atol=5e-2, rtol=5e-2), "bf16 mismatch vs reference"

    print("KERNEL_OK")
</pallas_src>

<mosaic_0001>
module attributes {stable_mosaic.version = 11 : i64} {
  func.func @kernel(%arg0: i32, %arg1: memref<256x32xf32, #tpu.memory_space<vmem>>, %arg2: memref<64x32xf32, #tpu.memory_space<vmem>>, %arg3: memref<64x1xf32, #tpu.memory_space<vmem>>, %arg4: memref<32x64xf32, #tpu.memory_space<vmem>>, %arg5: memref<32x1xf32, #tpu.memory_space<vmem>>, %arg6: memref<16x32xf32, #tpu.memory_space<vmem>>, %arg7: memref<16x1xf32, #tpu.memory_space<vmem>>, %arg8: memref<32x16xf32, #tpu.memory_space<vmem>>, %arg9: memref<32x1xf32, #tpu.memory_space<vmem>>, %arg10: memref<64x32xf32, #tpu.memory_space<vmem>>, %arg11: memref<64x1xf32, #tpu.memory_space<vmem>>, %arg12: memref<64x32xf32, #tpu.memory_space<vmem>>, %arg13: memref<1x32xf32, #tpu.memory_space<vmem>>, %arg14: memref<256x32xf32, #tpu.memory_space<vmem>>) attributes {dimension_semantics = [#tpu.dimension_semantics<parallel>], iteration_bounds = array<i64: 1>, scalar_prefetch = 0 : i64, scratch_operands = 0 : i64, tpu.core_type = #tpu.core_type<tc>, window_params = [{transform_indices = @transform_0, window_bounds = array<i64: 256, 32>}, {pipeline_mode = #tpu.pipeline_mode<synchronous>, transform_indices = @transform_1, window_bounds = array<i64: 64, 32>}, {pipeline_mode = #tpu.pipeline_mode<synchronous>, transform_indices = @transform_2, window_bounds = array<i64: 64, 1>}, {pipeline_mode = #tpu.pipeline_mode<synchronous>, transform_indices = @transform_3, window_bounds = array<i64: 32, 64>}, {pipeline_mode = #tpu.pipeline_mode<synchronous>, transform_indices = @transform_4, window_bounds = array<i64: 32, 1>}, {pipeline_mode = #tpu.pipeline_mode<synchronous>, transform_indices = @transform_5, window_bounds = array<i64: 16, 32>}, {pipeline_mode = #tpu.pipeline_mode<synchronous>, transform_indices = @transform_6, window_bounds = array<i64: 16, 1>}, {pipeline_mode = #tpu.pipeline_mode<synchronous>, transform_indices = @transform_7, window_bounds = array<i64: 32, 16>}, {pipeline_mode = #tpu.pipeline_mode<synchronous>, transform_indices = @transform_8, window_bounds = array<i64: 32, 1>}, {pipeline_mode = #tpu.pipeline_mode<synchronous>, transform_indices = @transform_9, window_bounds = array<i64: 64, 32>}, {pipeline_mode = #tpu.pipeline_mode<synchronous>, transform_indices = @transform_10, window_bounds = array<i64: 64, 1>}, {pipeline_mode = #tpu.pipeline_mode<synchronous>, transform_indices = @transform_11, window_bounds = array<i64: 64, 32>}, {pipeline_mode = #tpu.pipeline_mode<synchronous>, transform_indices = @transform_12, window_bounds = array<i64: 1, 32>}, {transform_indices = @transform_13, window_bounds = array<i64: 256, 32>}]} {
    %c0 = arith.constant 0 : index
    %c0_0 = arith.constant 0 : index
    %0 = vector.load %arg2[%c0, %c0_0] : memref<64x32xf32, #tpu.memory_space<vmem>>, vector<64x32xf32>
    %c0_1 = arith.constant 0 : index
    %c0_2 = arith.constant 0 : index
    %1 = vector.load %arg3[%c0_1, %c0_2] : memref<64x1xf32, #tpu.memory_space<vmem>>, vector<64x1xf32>
    %c0_3 = arith.constant 0 : index
    %c0_4 = arith.constant 0 : index
    %2 = vector.load %arg1[%c0_3, %c0_4] : memref<256x32xf32, #tpu.memory_space<vmem>>, vector<256x32xf32>
    %cst = arith.constant dense<0.000000e+00> : vector<64x256xf32>
    %3 = tpu.matmul %0, %2, %cst {dimension_numbers = #tpu.dot_dimension_numbers<[1], [1], [0], [0], [0, 0, 1, 0], [], []>} : vector<64x32xf32>, vector<256x32xf32>, vector<64x256xf32> -> vector<64x256xf32>
    %4 = vector.broadcast %1 : vector<64x1xf32> to vector<64x256xf32>
    %5 = arith.addf %3, %4 : vector<64x256xf32>
    %cst_5 = arith.constant 0.000000e+00 : f32
    %6 = vector.broadcast %cst_5 : f32 to vector<64x256xf32>
    %7 = arith.maximumf %5, %6 : vector<64x256xf32>
    %c0_6 = arith.constant 0 : index
    %c0_7 = arith.constant 0 : index
    %8 = vector.load %arg4[%c0_6, %c0_7] : memref<32x64xf32, #tpu.memory_space<vmem>>, vector<32x64xf32>
    %c0_8 = arith.constant 0 : index
    %c0_9 = arith.constant 0 : index
    %9 = vector.load %arg5[%c0_8, %c0_9] : memref<32x1xf32, #tpu.memory_space<vmem>>, vector<32x1xf32>
    %cst_10 = arith.constant dense<0.000000e+00> : vector<32x256xf32>
    %10 = tpu.matmul %8, %7, %cst_10 {dimension_numbers = #tpu.dot_dimension_numbers<[1], [0], [0], [1], [0, 0, 1, 1], [], []>} : vector<32x64xf32>, vector<64x256xf32>, vector<32x256xf32> -> vector<32x256xf32>
    %11 = vector.broadcast %9 : vector<32x1xf32> to vector<32x256xf32>
    %12 = arith.addf %10, %11 : vector<32x256xf32>
    %cst_11 = arith.constant 0.000000e+00 : f32
    %13 = vector.broadcast %cst_11 : f32 to vector<32x256xf32>
    %14 = arith.maximumf %12, %13 : vector<32x256xf32>
    %c0_12 = arith.constant 0 : index
    %c0_13 = arith.constant 0 : index
    %15 = vector.load %arg6[%c0_12, %c0_13] : memref<16x32xf32, #tpu.memory_space<vmem>>, vector<16x32xf32>
    %c0_14 = arith.constant 0 : index
    %c0_15 = arith.constant 0 : index
    %16 = vector.load %arg7[%c0_14, %c0_15] : memref<16x1xf32, #tpu.memory_space<vmem>>, vector<16x1xf32>
    %cst_16 = arith.constant dense<0.000000e+00> : vector<16x256xf32>
    %17 = tpu.matmul %15, %14, %cst_16 {dimension_numbers = #tpu.dot_dimension_numbers<[1], [0], [0], [1], [0, 0, 1, 1], [], []>} : vector<16x32xf32>, vector<32x256xf32>, vector<16x256xf32> -> vector<16x256xf32>
    %18 = vector.broadcast %16 : vector<16x1xf32> to vector<16x256xf32>
    %19 = arith.addf %17, %18 : vector<16x256xf32>
    %cst_17 = arith.constant 0.000000e+00 : f32
    %20 = vector.broadcast %cst_17 : f32 to vector<16x256xf32>
    %21 = arith.maximumf %19, %20 : vector<16x256xf32>
    %c0_18 = arith.constant 0 : index
    %c0_19 = arith.constant 0 : index
    %22 = vector.load %arg8[%c0_18, %c0_19] : memref<32x16xf32, #tpu.memory_space<vmem>>, vector<32x16xf32>
    %c0_20 = arith.constant 0 : index
    %c0_21 = arith.constant 0 : index
    %23 = vector.load %arg9[%c0_20, %c0_21] : memref<32x1xf32, #tpu.memory_space<vmem>>, vector<32x1xf32>
    %cst_22 = arith.constant dense<0.000000e+00> : vector<32x256xf32>
    %24 = tpu.matmul %22, %21, %cst_22 {dimension_numbers = #tpu.dot_dimension_numbers<[1], [0], [0], [1], [0, 0, 1, 1], [], []>} : vector<32x16xf32>, vector<16x256xf32>, vector<32x256xf32> -> vector<32x256xf32>
    %25 = vector.broadcast %23 : vector<32x1xf32> to vector<32x256xf32>
    %26 = arith.addf %24, %25 : vector<32x256xf32>
    %cst_23 = arith.constant 0.000000e+00 : f32
    %27 = vector.broadcast %cst_23 : f32 to vector<32x256xf32>
    %28 = arith.maximumf %26, %27 : vector<32x256xf32>
    %c0_24 = arith.constant 0 : index
    %c0_25 = arith.constant 0 : index
    %29 = vector.load %arg10[%c0_24, %c0_25] : memref<64x32xf32, #tpu.memory_space<vmem>>, vector<64x32xf32>
    %c0_26 = arith.constant 0 : index
    %c0_27 = arith.constant 0 : index
    %30 = vector.load %arg11[%c0_26, %c0_27] : memref<64x1xf32, #tpu.memory_space<vmem>>, vector<64x1xf32>
    %cst_28 = arith.constant dense<0.000000e+00> : vector<64x256xf32>
    %31 = tpu.matmul %29, %28, %cst_28 {dimension_numbers = #tpu.dot_dimension_numbers<[1], [0], [0], [1], [0, 0, 1, 1], [], []>} : vector<64x32xf32>, vector<32x256xf32>, vector<64x256xf32> -> vector<64x256xf32>
    %32 = vector.broadcast %30 : vector<64x1xf32> to vector<64x256xf32>
    %33 = arith.addf %31, %32 : vector<64x256xf32>
    %cst_29 = arith.constant 0.000000e+00 : f32
    %34 = vector.broadcast %cst_29 : f32 to vector<64x256xf32>
    %35 = arith.maximumf %33, %34 : vector<64x256xf32>
    %c0_30 = arith.constant 0 : index
    %c0_31 = arith.constant 0 : index
    %36 = vector.load %arg12[%c0_30, %c0_31] : memref<64x32xf32, #tpu.memory_space<vmem>>, vector<64x32xf32>
    %c0_32 = arith.constant 0 : index
    %c0_33 = arith.constant 0 : index
    %37 = vector.load %arg13[%c0_32, %c0_33] : memref<1x32xf32, #tpu.memory_space<vmem>>, vector<1x32xf32>
    %cst_34 = arith.constant dense<0.000000e+00> : vector<256x32xf32>
    %38 = tpu.matmul %35, %36, %cst_34 {dimension_numbers = #tpu.dot_dimension_numbers<[0], [0], [1], [1], [0, 1, 1, 1], [], []>} : vector<64x256xf32>, vector<64x32xf32>, vector<256x32xf32> -> vector<256x32xf32>
    %39 = vector.broadcast %37 : vector<1x32xf32> to vector<256x32xf32>
    %40 = arith.addf %38, %39 : vector<256x32xf32>
    %cst_35 = arith.constant 0.000000e+00 : f32
    %41 = vector.broadcast %cst_35 : f32 to vector<256x32xf32>
    %42 = arith.subf %41, %40 : vector<256x32xf32>
    %43 = math.exp %42 : vector<256x32xf32>
    %cst_36 = arith.constant 1.000000e+00 : f32
    %44 = vector.broadcast %cst_36 : f32 to vector<256x32xf32>
    %45 = arith.addf %44, %43 : vector<256x32xf32>
    %46 = tpu.reciprocal %45 {approx = true} : vector<256x32xf32> -> vector<256x32xf32>
    %c0_37 = arith.constant 0 : index
    %c0_38 = arith.constant 0 : index
    %47 = vector.load %arg14[%c0_37, %c0_38] : memref<256x32xf32, #tpu.memory_space<vmem>>, vector<256x32xf32>
    tpu.vector_store %arg14[%c0_37, %c0_38], %46 {strides = array<i32>} : memref<256x32xf32, #tpu.memory_space<vmem>>, vector<256x32xf32>,
    return
  }
  func.func @transform_0(%arg0: i32) -> (i32, i32) {
    %c0_i32 = arith.constant 0 : i32
    %c0_i32_0 = arith.constant 0 : i32
    return %arg0, %c0_i32 : i32, i32
  }
  func.func @transform_1(%arg0: i32) -> (i32, i32) {
    %c0_i32 = arith.constant 0 : i32
    %c0_i32_0 = arith.constant 0 : i32
    %c0_i32_1 = arith.constant 0 : i32
    return %c0_i32, %c0_i32_0 : i32, i32
  }
  func.func @transform_2(%arg0: i32) -> (i32, i32) {
    %c0_i32 = arith.constant 0 : i32
    %c0_i32_0 = arith.constant 0 : i32
    %c0_i32_1 = arith.constant 0 : i32
    return %c0_i32, %c0_i32_0 : i32, i32
  }
  func.func @transform_3(%arg0: i32) -> (i32, i32) {
    %c0_i32 = arith.constant 0 : i32
    %c0_i32_0 = arith.constant 0 : i32
    %c0_i32_1 = arith.constant 0 : i32
    return %c0_i32, %c0_i32_0 : i32, i32
  }
  func.func @transform_4(%arg0: i32) -> (i32, i32) {
    %c0_i32 = arith.constant 0 : i32
    %c0_i32_0 = arith.constant 0 : i32
    %c0_i32_1 = arith.constant 0 : i32
    return %c0_i32, %c0_i32_0 : i32, i32
  }
  func.func @transform_5(%arg0: i32) -> (i32, i32) {
    %c0_i32 = arith.constant 0 : i32
    %c0_i32_0 = arith.constant 0 : i32
    %c0_i32_1 = arith.constant 0 : i32
    return %c0_i32, %c0_i32_0 : i32, i32
  }
  func.func @transform_6(%arg0: i32) -> (i32, i32) {
    %c0_i32 = arith.constant 0 : i32
    %c0_i32_0 = arith.constant 0 : i32
    %c0_i32_1 = arith.constant 0 : i32
    return %c0_i32, %c0_i32_0 : i32, i32
  }
  func.func @transform_7(%arg0: i32) -> (i32, i32) {
    %c0_i32 = arith.constant 0 : i32
    %c0_i32_0 = arith.constant 0 : i32
    %c0_i32_1 = arith.constant 0 : i32
    return %c0_i32, %c0_i32_0 : i32, i32
  }
  func.func @transform_8(%arg0: i32) -> (i32, i32) {
    %c0_i32 = arith.constant 0 : i32
    %c0_i32_0 = arith.constant 0 : i32
    %c0_i32_1 = arith.constant 0 : i32
    return %c0_i32, %c0_i32_0 : i32, i32
  }
  func.func @transform_9(%arg0: i32) -> (i32, i32) {
    %c0_i32 = arith.constant 0 : i32
    %c0_i32_0 = arith.constant 0 : i32
    %c0_i32_1 = arith.constant 0 : i32
    return %c0_i32, %c0_i32_0 : i32, i32
  }
  func.func @transform_10(%arg0: i32) -> (i32, i32) {
    %c0_i32 = arith.constant 0 : i32
    %c0_i32_0 = arith.constant 0 : i32
    %c0_i32_1 = arith.constant 0 : i32
    return %c0_i32, %c0_i32_0 : i32, i32
  }
  func.func @transform_11(%arg0: i32) -> (i32, i32) {
    %c0_i32 = arith.constant 0 : i32
    %c0_i32_0 = arith.constant 0 : i32
    %c0_i32_1 = arith.constant 0 : i32
    return %c0_i32, %c0_i32_0 : i32, i32
  }
  func.func @transform_12(%arg0: i32) -> (i32, i32) {
    %c0_i32 = arith.constant 0 : i32
    %c0_i32_0 = arith.constant 0 : i32
    %c0_i32_1 = arith.constant 0 : i32
    return %c0_i32, %c0_i32_0 : i32, i32
  }
  func.func @transform_13(%arg0: i32) -> (i32, i32) {
    %c0_i32 = arith.constant 0 : i32
    %c0_i32_0 = arith.constant 0 : i32
    return %arg0, %c0_i32 : i32, i32
  }
}

</mosaic_0001>

<bundles_post_ra>
// kernel: tpu_custom_call.1
= control target key start
LH: loop header
LB: loop body
LE: loop exit
PB: predicated region body
PF: predicated region fallthrough
CT: control target
= control target key end

     0   :  { %vm132_vm0 = vcmask 261120   ;;  %v1955_v3 = vmov 0   ;;  %vm410_vm1 = vcmask 523264   ;;  %vm649_vm2 = vcmask 130048   ;;  %s2584_s0 = inlined_call_operand.vmem [shape: f32[256,32], index: 0, kind: input, shape index: {}]   ;;  %s2585_s1 = inlined_call_operand.vmem [shape: f32[64,32], index: 1, kind: input, shape index: {}]   ;;  %s2586_s2 = inlined_call_operand.vmem [shape: f32[64,1], index: 2, kind: input, shape index: {}]   ;;  %s2587_s4 = inlined_call_operand.vmem [shape: f32[32,1], index: 4, kind: input, shape index: {}]   ;;  %s2588_s6 = inlined_call_operand.vmem [shape: f32[16,1], index: 6, kind: input, shape index: {}]   ;;  %s2589_s8 = inlined_call_operand.vmem [shape: f32[32,1], index: 8, kind: input, shape index: {}]   ;;  %s2590_s10 = inlined_call_operand.vmem [shape: f32[64,1], index: 10, kind: input, shape index: {}]   ;;  %s2591_s3 = inlined_call_operand.vmem [shape: f32[32,64], index: 3, kind: input, shape index: {}]   ;;  %s2592_s5 = inlined_call_operand.vmem [shape: f32[16,32], index: 5, kind: input, shape index: {}]   ;;  %s2593_s7 = inlined_call_operand.vmem [shape: f32[32,16], index: 7, kind: input, shape index: {}]   ;;  %s2594_s9 = inlined_call_operand.vmem [shape: f32[64,32], index: 9, kind: input, shape index: {}]   ;;  %s2595_s11 = inlined_call_operand.vmem [shape: f32[64,32], index: 11, kind: input, shape index: {}]   ;;  %s2596_s12 = inlined_call_operand.vmem [shape: f32[1,32], index: 12, kind: input, shape index: {}]   ;;  %s2597_s13 = inlined_call_operand.vmem [shape: f32[256,32], index: 13, kind: output, shape index: {}]  }
   0x1   :  { %v91_v0 = vld [vmem:[%s2584_s0 + $0xf8] sm:$0xff]  ;;  %v90_v2 = vld [vmem:[%s2584_s0 + $0xf0] sm:$0xff]  ;;  %1825 = vset.pattern.permute.xlu0 %v1955_v3  ;;  %1826 = vset.pattern.permute.xlu1 %v1955_v3  ;;  %v89_v5 = vld [vmem:[%s2584_s0 + $0xe8] sm:$0xff]  ;;  %v1956_v3 = vmov 0.0  }
   0x2   :  { %v75_v1 = vld [vmem:[%s2584_s0 + $0x78] sm:$0xff]  ;;  %1655 = vmatprep.subr.msk.mxu0 %vm132_vm0, %v91_v0  ;;  %v74_v4 = vld [vmem:[%s2584_s0 + $0x70] sm:$0xff]  ;;  %v73_v6 = vld [vmem:[%s2584_s0 + $0x68] sm:$0xff]  ;;  %487 = vmatprep.mubr.f32.mxu1 %v1956_v3 }
   0x3   :  { %1656 = vmatpush3.xpose.msk.msra.mxu0 %vm132_vm0, %v75_v1  ;;  %v88_v7 = vld [vmem:[%s2584_s0 + $0xe0] sm:$0xff]  ;;  %v87_v10 = vld [vmem:[%s2584_s0 + $0xd8] sm:$0xff]  ;;  %v57_v12 = vld [vmem:[%s2586_s2 + $0x28] sm:$0xff] }
   0x4   :  { %1657 = vmatprep.subr.msk.mxu0 %vm132_vm0, %v90_v2  ;;  %v2057_v8 = vld [vmem:[%s2585_s1] sm:$0xff]  ;;  %v59_v11 = vld [vmem:[%s2586_s2 + $0x38] sm:$0xff]  ;;  %v58_v14 = vld [vmem:[%s2586_s2 + $0x30] sm:$0xff]  ;;  %119 = vperm.xlu1 %1826, %v57_v12  }
   0x5   :  { %v72_v9 = vld [vmem:[%s2584_s0 + $0x60] sm:$0xff]  ;;  %1687 = vmatprep.mubr.msk.f32.mxu0 %vm132_vm0, %v2057_v8  ;;  %129 = vperm.xlu0 %1825, %v59_v11   ;;  %v71_v13 = vld [vmem:[%s2584_s0 + $0x58] sm:$0xff]  ;;  %v86_v15 = vld [vmem:[%s2584_s0 + $0xd0] sm:$0xff] }
   0x6   :  { %v56_v16 = vld [vmem:[%s2586_s2 + $0x20] sm:$0xff]  ;;  %v70_v17 = vld [vmem:[%s2584_s0 + $0x50] sm:$0xff]  ;;  %v55_v18 = vld [vmem:[%s2586_s2 + $0x18] sm:$0xff] }
   0x7   :  { %1658 = vmatpush3.xpose.msk.msra.mxu0 %vm132_vm0, %v74_v4  ;;  %v85_v19 = vld [vmem:[%s2584_s0 + $0xc8] sm:$0xff]  ;;  %v54_v20 = vld [vmem:[%s2586_s2 + $0x10] sm:$0xff]  ;;  %v84_v23 = vld [vmem:[%s2584_s0 + $0xc0] sm:$0xff] }
   0x8   :  { %1659 = vmatprep.subr.msk.mxu0 %vm132_vm0, %v89_v5  ;;  %114 = vperm.xlu1 %1826, %v56_v16   ;;  %v69_v21 = vld [vmem:[%s2584_s0 + $0x48] sm:$0xff]  ;;  %v52_v24 = vld [vmem:[%s2586_s2] sm:$0xff]  ;;  %v389_v26 = vld [vmem:[%s2587_s4 + $0x18] sm:$0xff] }
   0x9   :  { %124 = vperm.xlu0 %1825, %v58_v14   ;;  %v53_v22 = vld [vmem:[%s2586_s2 + $0x8] sm:$0xff]  ;;  %v68_v25 = vld [vmem:[%s2584_s0 + $0x40] sm:$0xff]  ;;  %v83_v27 = vld [vmem:[%s2584_s0 + $0xb8] sm:$0xff] }
   0xa   :  { %v388_v28 = vld [vmem:[%s2587_s4 + $0x10] sm:$0xff]  ;;  %v67_v29 = vld [vmem:[%s2584_s0 + $0x38] sm:$0xff]  ;;  %v387_v30 = vld [vmem:[%s2587_s4 + $0x8] sm:$0xff] }
   0xb   :  { %1660 = vmatpush3.xpose.msk.msra.mxu0 %vm132_vm0, %v73_v6  ;;  %v82_v31 = vld [vmem:[%s2584_s0 + $0xb0] sm:$0xff]  ;;  %v386_v32 = vld [vmem:[%s2587_s4] sm:$0xff]  ;;  %v523_v34 = vld [vmem:[%s2588_s6 + $0x8] sm:$0xff] }
   0xc   :  { %1661 = vmatprep.subr.msk.mxu0 %vm132_vm0, %v88_v7  ;;  %104 = vperm.xlu1 %1826, %v54_v20   ;;  %v66_v33 = vld [vmem:[%s2584_s0 + $0x30] sm:$0xff]  ;;  %v81_v35 = vld [vmem:[%s2584_s0 + $0xa8] sm:$0xff]  ;;  %v522_v36 = vld [vmem:[%s2588_s6] sm:$0xff] }
   0xd   :  { %109 = vperm.xlu0 %1825, %v55_v18   ;;  %v65_v37 = vld [vmem:[%s2584_s0 + $0x28] sm:$0xff]  ;;  %v628_v38 = vld [vmem:[%s2589_s8 + $0x18] sm:$0xff]  ;;  %v80_v39 = vld [vmem:[%s2584_s0 + $0xa0] sm:$0xff] }
   0xe   :  { %v627_v40 = vld [vmem:[%s2589_s8 + $0x10] sm:$0xff]  ;;  %v64_v41 = vld [vmem:[%s2584_s0 + $0x20] sm:$0xff]  ;;  %v626_v42 = vld [vmem:[%s2589_s8 + $0x8] sm:$0xff] }
   0xf   :  { %1662 = vmatpush3.xpose.msk.msra.mxu0 %vm132_vm0, %v72_v9  ;;  %v79_v43 = vld [vmem:[%s2584_s0 + $0x98] sm:$0xff]  ;;  %v625_v44 = vld [vmem:[%s2589_s8] sm:$0xff]  ;;  %v78_v47 = vld [vmem:[%s2584_s0 + $0x90] sm:$0xff] }
  0x10   :  { %1663 = vmatprep.subr.msk.mxu0 %vm132_vm0, %v87_v10  ;;  %94 = vperm.xlu1 %1826, %v52_v24   ;;  %v63_v45 = vld [vmem:[%s2584_s0 + $0x18] sm:$0xff]  ;;  %v767_v46 = vld [vmem:[%s2590_s10] sm:$0xff]  ;;  %v768_v48 = vld [vmem:[%s2590_s10 + $0x8] sm:$0xff] }
  0x11   :  { %99 = vperm.xlu0 %1825, %v53_v22   ;;  %v62_v49 = vld [vmem:[%s2584_s0 + $0x10] sm:$0xff]  ;;  %v77_v51 = vld [vmem:[%s2584_s0 + $0x88] sm:$0xff]  ;;  %v770_v52 = vld [vmem:[%s2590_s10 + $0x18] sm:$0xff] }
  0x12   :  { %v769_v50 = vld [vmem:[%s2590_s10 + $0x10] sm:$0xff]  ;;  %v61_v53 = vld [vmem:[%s2584_s0 + $0x8] sm:$0xff]  ;;  %v771_v54 = vld [vmem:[%s2590_s10 + $0x20] sm:$0xff] }
  0x13   :  { %1664 = vmatpush3.xpose.msk.msra.mxu0 %vm132_vm0, %v71_v13  ;;  %v76_v55 = vld [vmem:[%s2584_s0 + $0x80] sm:$0xff]  ;;  %v772_v56 = vld [vmem:[%s2590_s10 + $0x28] sm:$0xff]  ;;  %v773_v58 = vld [vmem:[%s2590_s10 + $0x30] sm:$0xff] }
  0x14   :  { %1665 = vmatprep.subr.msk.mxu0 %vm132_vm0, %v86_v15  ;;  %402 = vperm.xlu1 %1826, %v388_v28   ;;  %v60_v57 = vld [vmem:[%s2584_s0] sm:$0xff]  ;;  %v774_v59 = vld [vmem:[%s2590_s10 + $0x38] sm:$0xff]  ;;  %v45_v60 = vld [vmem:[%s2585_s1 + $0x8] sm:$0xff] }
  0x15   :  { %407 = vperm.xlu0 %1825, %v389_v26   ;;  %v46_v61 = vld [vmem:[%s2585_s1 + $0x10] sm:$0xff]  ;;  %v47_v62 = vld [vmem:[%s2585_s1 + $0x18] sm:$0xff]  ;;  %v48_v63 = vld [vmem:[%s2585_s1 + $0x20] sm:$0xff] }
  0x16   :  { %v49_v0 = vld [vmem:[%s2585_s1 + $0x28] sm:$0xff]  ;;  %v50_v1 = vld [vmem:[%s2585_s1 + $0x30] sm:$0xff]  ;;  %v51_v2 = vld [vmem:[%s2585_s1 + $0x38] sm:$0xff] }
  0x17   :  { %1666 = vmatpush3.xpose.msk.msra.mxu0 %vm132_vm0, %v70_v17 }
  0x18   :  { %1667 = vmatprep.subr.msk.mxu0 %vm132_vm0, %v85_v19  ;;  %392 = vperm.xlu1 %1826, %v386_v32  }
  0x19   :  { %397 = vperm.xlu0 %1825, %v387_v30  }
  0x1b   :  { %1668 = vmatpush3.xpose.msk.msra.mxu0 %vm132_vm0, %v69_v21 }
  0x1c   :  { %1669 = vmatprep.subr.msk.mxu0 %vm132_vm0, %v84_v23  ;;  %526 = vperm.xlu1 %1826, %v522_v36  }
  0x1d   :  { %531 = vperm.xlu0 %1825, %v523_v34  }
  0x1f   :  { %1670 = vmatpush3.xpose.msk.msra.mxu0 %vm132_vm0, %v68_v25 }
  0x20   :  { %1671 = vmatprep.subr.msk.mxu0 %vm132_vm0, %v83_v27  ;;  %641 = vperm.xlu1 %1826, %v627_v40  }
  0x21   :  { %646 = vperm.xlu0 %1825, %v628_v38  }
  0x23   :  { %1672 = vmatpush3.xpose.msk.msra.mxu0 %vm132_vm0, %v67_v29 }
  0x24   :  { %1673 = vmatprep.subr.msk.mxu0 %vm132_vm0, %v82_v31  ;;  %631 = vperm.xlu1 %1826, %v625_v44  }
  0x25   :  { %636 = vperm.xlu0 %1825, %v626_v42  }
  0x27   :  { %1674 = vmatpush3.xpose.msk.msra.mxu0 %vm132_vm0, %v66_v33 }
  0x28   :  { %1675 = vmatprep.subr.msk.mxu0 %vm132_vm0, %v81_v35  ;;  %782 = vperm.xlu1 %1826, %v768_v48  }
  0x29   :  { %777 = vperm.xlu0 %1825, %v767_v46  }
  0x2b   :  { %1676 = vmatpush3.xpose.msk.msra.mxu0 %vm132_vm0, %v65_v37 }
  0x2c   :  { %1677 = vmatprep.subr.msk.mxu0 %vm132_vm0, %v80_v39  ;;  %792 = vperm.xlu1 %1826, %v770_v52  }
  0x2d   :  { %787 = vperm.xlu0 %1825, %v769_v50  }
  0x2f   :  { %1678 = vmatpush3.xpose.msk.msra.mxu0 %vm132_vm0, %v64_v41 }
  0x30   :  { %1679 = vmatprep.subr.msk.mxu0 %vm132_vm0, %v79_v43  ;;  %802 = vperm.xlu1 %1826, %v772_v56  }
  0x31   :  { %797 = vperm.xlu0 %1825, %v771_v54  }
  0x33   :  { %1680 = vmatpush3.xpose.msk.msra.mxu0 %vm132_vm0, %v63_v45 }
  0x34   :  { %1681 = vmatprep.subr.msk.mxu0 %vm132_vm0, %v78_v47  ;;  %812 = vperm.xlu1 %1826, %v774_v59  }
  0x35   :  { %807 = vperm.xlu0 %1825, %v773_v58  }
  0x37   :  { %1682 = vmatpush3.xpose.msk.msra.mxu0 %vm132_vm0, %v62_v49 }
  0x38   :  { %1683 = vmatprep.subr.msk.mxu0 %vm132_vm0, %v77_v51 }
  0x3b   :  { %1684 = vmatpush3.xpose.msk.msra.mxu0 %vm132_vm0, %v61_v53 }
  0x3c   :  { %1685 = vmatprep.subr.msk.mxu0 %vm132_vm0, %v76_v55 }
  0x3f   :  { %1686 = vmatpush3.xpose.msk.msra.mxu0 %vm132_vm0, %v60_v57 }
  0x42   :  { %1688 = vmatmul.mubr.msk.f32.vlgmr.msra.gmra.mxu0 %vm132_vm0, %v2057_v8 }
  0x43   :  { %1689 = vmatprep.mubr.msk.f32.mxu0 %vm132_vm0, %v45_v60 }
  0x46   :  { %1690 = vmatmul.mubr.msk.f32.gmra.mxu0 %vm132_vm0, %v45_v60  ;;  %v382_v60 = vld [vmem:[%s2591_s3] sm:$0xff] }
  0x47   :  { %1691 = vmatprep.mubr.msk.f32.mxu0 %vm132_vm0, %v46_v61 }
  0x4a   :  { %1692 = vmatmul.mubr.msk.f32.gmra.mxu0 %vm132_vm0, %v46_v61  ;;  %v383_v61 = vld [vmem:[%s2591_s3 + $0x8] sm:$0xff] }
  0x4b   :  { %1693 = vmatprep.mubr.msk.f32.mxu0 %vm132_vm0, %v47_v62 }
  0x4e   :  { %1694 = vmatmul.mubr.msk.f32.gmra.mxu0 %vm132_vm0, %v47_v62  ;;  %v384_v62 = vld [vmem:[%s2591_s3 + $0x10] sm:$0xff] }
  0x4f   :  { %1695 = vmatprep.mubr.msk.f32.mxu0 %vm132_vm0, %v48_v63 }
  0x52   :  { %1696 = vmatmul.mubr.msk.f32.gmra.mxu0 %vm132_vm0, %v48_v63  ;;  %v385_v63 = vld [vmem:[%s2591_s3 + $0x18] sm:$0xff] }
  0x53   :  { %1697 = vmatprep.mubr.msk.f32.mxu0 %vm132_vm0, %v49_v0 }
  0x56   :  { %1698 = vmatmul.mubr.msk.f32.gmra.mxu0 %vm132_vm0, %v49_v0 }
  0x57   :  { %1699 = vmatprep.mubr.msk.f32.mxu0 %vm132_vm0, %v50_v1 }
  0x5a   :  { %1700 = vmatmul.mubr.msk.f32.gmra.mxu0 %vm132_vm0, %v50_v1 }
  0x5b   :  { %1701 = vmatprep.mubr.msk.f32.mxu0 %vm132_vm0, %v51_v2 }
  0x5e   :  { %1702 = vmatmul.mubr.msk.f32.gmra.mxu0 %vm132_vm0, %v51_v2 }
  0x7f   :  { %v120_v17 = vpop.permute.xlu1 %119 }
  0x80   :  { %v130_v15 = vpop.permute.xlu0 %129 }
  0x83   :  { %v115_v22 = vpop.permute.xlu1 %114 }
  0x84   :  { %v125_v20 = vpop.permute.xlu0 %124 }
  0x87   :  { %v105_v35 = vpop.permute.xlu1 %104 }
  0x88   :  { %v110_v30 = vpop.permute.xlu0 %109 }
  0x8b   :  { %v95_v49 = vpop.permute.xlu1 %94 }
  0x8c   :  { %v100_v44 = vpop.permute.xlu0 %99 }
 0x102   :  { %v319_v4 = vpop.f32.mrf.mxu0 }
 0x103   :  { %v320_v54 = vadd.f32 %v319_v4, %v95_v49 }
 0x104   :  { %v321_v5 = vpop.f32.mrf.mxu0 }
 0x105   :  { %v322_v52 = vadd.f32 %v321_v5, %v95_v49  ;;  %v366_v59 = vmax.f32 %v320_v54, 0.0 }
 0x106   :  { %v325_v6 = vpop.f32.mrf.mxu0 }
 0x107   :  { %v326_v50 = vadd.f32 %v325_v6, %v100_v44  ;;  %v367_v58 = vmax.f32 %v322_v52, 0.0  ;;  %v408_v6 = vpop.permute.xlu0 %407 }
 0x108   :  { %v327_v7 = vpop.f32.mrf.mxu0 }
 0x109   :  { %v328_v47 = vadd.f32 %v327_v7, %v100_v44  ;;  %v368_v57 = vmax.f32 %v326_v50, 0.0 }
 0x10a   :  { %v331_v8 = vpop.f32.mrf.mxu0 }
 0x10b   :  { %v332_v45 = vadd.f32 %v331_v8, %v105_v35  ;;  %v369_v56 = vmax.f32 %v328_v47, 0.0  ;;  %v403_v8 = vpop.permute.xlu1 %402  ;;  %v623_v47 = vld [vmem:[%s2593_s7 + $0x10] sm:$0xff] }
 0x10c   :  { %v333_v9 = vpop.f32.mrf.mxu0 }
 0x10d   :  { %v334_v42 = vadd.f32 %v333_v9, %v105_v35  ;;  %v370_v55 = vmax.f32 %v332_v45, 0.0  ;;  %v621_v45 = vld [vmem:[%s2593_s7] sm:$0xff] }
 0x10e   :  { %v337_v10 = vpop.f32.mrf.mxu0 }
 0x10f   :  { %v338_v40 = vadd.f32 %v337_v10, %v110_v30  ;;  %v371_v53 = vmax.f32 %v334_v42, 0.0 }
 0x110   :  { %v339_v11 = vpop.f32.mrf.mxu0 }
 0x111   :  { %v340_v38 = vadd.f32 %v339_v11, %v110_v30  ;;  %v372_v51 = vmax.f32 %v338_v40, 0.0  ;;  %v521_v30 = vld [vmem:[%s2592_s5 + $0x8] sm:$0xff] }
 0x112   :  { %v343_v12 = vpop.f32.mrf.mxu0 }
 0x113   :  { %v344_v36 = vadd.f32 %v343_v12, %v115_v22  ;;  %v373_v48 = vmax.f32 %v340_v38, 0.0 }
 0x114   :  { %v345_v13 = vpop.f32.mrf.mxu0 }
 0x115   :  { %v346_v33 = vadd.f32 %v345_v13, %v115_v22  ;;  %v374_v46 = vmax.f32 %v344_v36, 0.0 }
 0x116   :  { %v349_v14 = vpop.f32.mrf.mxu0 }
 0x117   :  { %v350_v31 = vadd.f32 %v349_v14, %v120_v17  ;;  %v375_v43 = vmax.f32 %v346_v33, 0.0  ;;  %v398_v14 = vpop.permute.xlu0 %397 }
 0x118   :  { %v351_v16 = vpop.f32.mrf.mxu0 }
 0x119   :  { %v352_v28 = vadd.f32 %v351_v16, %v120_v17  ;;  %v376_v41 = vmax.f32 %v350_v31, 0.0 }
 0x11a   :  { %v355_v18 = vpop.f32.mrf.mxu0 }
 0x11b   :  { %v356_v27 = vadd.f32 %v355_v18, %v125_v20  ;;  %v377_v39 = vmax.f32 %v352_v28, 0.0  ;;  %v393_v18 = vpop.permute.xlu1 %392 }
 0x11c   :  { %v357_v19 = vpop.f32.mrf.mxu0 }
 0x11d   :  { %v358_v25 = vadd.f32 %v357_v19, %v125_v20  ;;  %v378_v37 = vmax.f32 %v356_v27, 0.0 }
 0x11e   :  { %v361_v21 = vpop.f32.mrf.mxu0 }
 0x11f   :  { %v362_v23 = vadd.f32 %v361_v21, %v130_v15  ;;  %v379_v34 = vmax.f32 %v358_v25, 0.0  ;;  %v527_v35 = vpop.permute.xlu1 %526 }
 0x120   :  { %v363_v24 = vpop.f32.mrf.mxu0 }
 0x121   :  { %v364_v26 = vadd.f32 %v363_v24, %v130_v15  ;;  %v380_v32 = vmax.f32 %v362_v23, 0.0 }
 0x123   :  { %v381_v29 = vmax.f32 %v364_v26, 0.0 }
 0x125   :  { %439 = vmatprep.subr.mxu1 %v381_v29  ;;  %v520_v29 = vld [vmem:[%s2592_s5] sm:$0xff] }
 0x126   :  { %440 = vmatpush1.msra.mxu1 %v380_v32 }
 0x127   :  { %441 = vmatprep.subr.mxu1 %v379_v34  ;;  %v532_v34 = vpop.permute.xlu0 %531 }
 0x128   :  { %442 = vmatpush1.msra.mxu1 %v378_v37 }
 0x129   :  { %443 = vmatprep.subr.mxu1 %v377_v39 }
 0x12a   :  { %444 = vmatpush1.msra.mxu1 %v376_v41 }
 0x12b   :  { %445 = vmatprep.subr.mxu1 %v375_v43  ;;  %v647_v54 = vpop.permute.xlu0 %646 }
 0x12c   :  { %446 = vmatpush1.msra.mxu1 %v374_v46  ;;  %v622_v46 = vld [vmem:[%s2593_s7 + $0x8] sm:$0xff] }
 0x12d   :  { %447 = vmatprep.subr.mxu1 %v373_v48  ;;  %v624_v48 = vld [vmem:[%s2593_s7 + $0x18] sm:$0xff] }
 0x12e   :  { %448 = vmatpush1.msra.mxu1 %v372_v51 }
 0x12f   :  { %449 = vmatprep.subr.mxu1 %v371_v53 }
 0x130   :  { %450 = vmatpush1.msra.mxu1 %v370_v55 }
 0x131   :  { %451 = vmatprep.subr.mxu1 %v369_v56  ;;  %v642_v56 = vpop.permute.xlu1 %641 }
 0x132   :  { %452 = vmatpush1.msra.mxu1 %v368_v57 }
 0x133   :  { %453 = vmatprep.subr.mxu1 %v367_v58 }
 0x134   :  { %454 = vmatpush1.msra.mxu1 %v366_v59 }
 0x135   :  { %1604 = vmatmul.mubr.msk.f32.vlgmr.msra.gmra.mxu1 %vm410_vm1, %v382_v60 }
 0x136   :  { %493 = vmatprep.mubr.f32.mxu1 %v1956_v3 }
 0x139   :  { %1605 = vmatmul.mubr.msk.f32.gmra.mxu1 %vm410_vm1, %v383_v61 }
 0x13a   :  { %499 = vmatprep.mubr.f32.mxu1 %v1956_v3 }
 0x13d   :  { %1606 = vmatmul.mubr.msk.f32.gmra.mxu1 %vm410_vm1, %v384_v62  ;;  %v637_v62 = vpop.permute.xlu0 %636 }
 0x13e   :  { %505 = vmatprep.mubr.f32.mxu1 %v1956_v3 }
 0x141   :  { %1607 = vmatmul.mubr.msk.f32.gmra.mxu1 %vm410_vm1, %v385_v63 }
 0x142   :  { %604 = vmatprep.mubr.f32.mxu1 %v1956_v3 }
 0x1f5   :  { %v489_v0 = vpop.f32.mrf.mxu1 }
 0x1f6   :  { %v490_v23 = vadd.f32 %v489_v0, %v393_v18 }
 0x1f7   :  { %v491_v1 = vpop.f32.mrf.mxu1 }
 0x1f8   :  { %v492_v21 = vadd.f32 %v491_v1, %v393_v18  ;;  %v512_v28 = vmax.f32 %v490_v23, 0.0  ;;  %v763_v18 = vld [vmem:[%s2594_s9 + $0x20] sm:$0xff]  ;;  %v974_v23 = vld [vmem:[%s2595_s11 + $0x30] sm:$0xff] }
 0x1f9   :  { %v495_v2 = vpop.f32.mrf.mxu1 }
 0x1fa   :  { %v496_v19 = vadd.f32 %v495_v2, %v398_v14  ;;  %v513_v27 = vmax.f32 %v492_v21, 0.0  ;;  %v632_v2 = vpop.permute.xlu1 %631  ;;  %v766_v21 = vld [vmem:[%s2594_s9 + $0x38] sm:$0xff] }
 0x1fb   :  { %v497_v4 = vpop.f32.mrf.mxu1 }
 0x1fc   :  { %v498_v16 = vadd.f32 %v497_v4, %v398_v14  ;;  %v514_v26 = vmax.f32 %v496_v19, 0.0  ;;  %v759_v14 = vld [vmem:[%s2594_s9] sm:$0xff]  ;;  %v764_v19 = vld [vmem:[%s2594_s9 + $0x28] sm:$0xff] }
 0x1fd   :  { %v501_v5 = vpop.f32.mrf.mxu1 }
 0x1fe   :  { %v502_v15 = vadd.f32 %v501_v5, %v403_v8  ;;  %v515_v25 = vmax.f32 %v498_v16, 0.0  ;;  %v761_v16 = vld [vmem:[%s2594_s9 + $0x10] sm:$0xff] }
 0x1ff   :  { %v503_v7 = vpop.f32.mrf.mxu1 }
 0x200   :  { %v504_v12 = vadd.f32 %v503_v7, %v403_v8  ;;  %v516_v24 = vmax.f32 %v502_v15, 0.0  ;;  %v760_v15 = vld [vmem:[%s2594_s9 + $0x8] sm:$0xff] }
 0x201   :  { %v507_v9 = vpop.f32.mrf.mxu1 }
 0x202   :  { %v508_v10 = vadd.f32 %v507_v9, %v408_v6  ;;  %v517_v22 = vmax.f32 %v504_v12, 0.0 }
 0x203   :  { %v509_v11 = vpop.f32.mrf.mxu1 }
 0x204   :  { %v510_v13 = vadd.f32 %v509_v11, %v408_v6  ;;  %v518_v20 = vmax.f32 %v508_v10, 0.0 }
 0x206   :  { %v519_v17 = vmax.f32 %v510_v13, 0.0 }
 0x208   :  { %564 = vmatprep.subr.mxu1 %v519_v17  ;;  %v762_v17 = vld [vmem:[%s2594_s9 + $0x18] sm:$0xff] }
 0x209   :  { %565 = vmatpush1.msra.mxu1 %v518_v20  ;;  %v765_v20 = vld [vmem:[%s2594_s9 + $0x30] sm:$0xff] }
 0x20a   :  { %566 = vmatprep.subr.mxu1 %v517_v22  ;;  %v975_v22 = vld [vmem:[%s2595_s11 + $0x38] sm:$0xff] }
 0x20b   :  { %567 = vmatpush1.msra.mxu1 %v516_v24  ;;  %1743 = vmatprep.subr.mxu0 %v975_v22  ;;  %v972_v24 = vld [vmem:[%s2595_s11 + $0x20] sm:$0xff] }
 0x20c   :  { %568 = vmatprep.subr.mxu1 %v515_v25  ;;  %1744 = vmatpush3.msra.mxu0 %v975_v22  ;;  %v971_v25 = vld [vmem:[%s2595_s11 + $0x18] sm:$0xff] }
 0x20d   :  { %569 = vmatpush1.msra.mxu1 %v514_v26  ;;  %1745 = vmatprep.subr.mxu0 %v974_v23  ;;  %v970_v26 = vld [vmem:[%s2595_s11 + $0x10] sm:$0xff] }
 0x20e   :  { %570 = vmatprep.subr.mxu1 %v513_v27  ;;  %1746 = vmatpush3.msra.mxu0 %v974_v23  ;;  %v778_v27 = vpop.permute.xlu0 %777 }
 0x20f   :  { %571 = vmatpush1.msra.mxu1 %v512_v28 }
 0x210   :  { %1608 = vmatmul.mubr.msk.f32.vlgmr.msra.gmra.mxu1 %vm132_vm0, %v520_v29 }
 0x211   :  { %610 = vmatprep.mubr.f32.mxu1 %v1956_v3 }
 0x214   :  { %1609 = vmatmul.mubr.msk.f32.gmra.mxu1 %vm132_vm0, %v521_v30  ;;  %v969_v30 = vld [vmem:[%s2595_s11 + $0x8] sm:$0xff] }
 0x215   :  { %726 = vmatprep.mubr.f32.mxu1 %v1956_v3 }
 0x2d0   :  { %v606_v31 = vpop.f32.mrf.mxu1 }
 0x2d1   :  { %v607_v40 = vadd.f32 %v606_v31, %v527_v35 }
 0x2d2   :  { %v608_v32 = vpop.f32.mrf.mxu1 }
 0x2d3   :  { %v609_v38 = vadd.f32 %v608_v32, %v527_v35  ;;  %v617_v44 = vmax.f32 %v607_v40, 0.0  ;;  %v783_v35 = vpop.permute.xlu1 %782 }
 0x2d4   :  { %v612_v33 = vpop.f32.mrf.mxu1 }
 0x2d5   :  { %v613_v36 = vadd.f32 %v612_v33, %v532_v34  ;;  %v618_v43 = vmax.f32 %v609_v38, 0.0 }
 0x2d6   :  { %v614_v37 = vpop.f32.mrf.mxu1 }
 0x2d7   :  { %v615_v39 = vadd.f32 %v614_v37, %v532_v34  ;;  %v619_v42 = vmax.f32 %v613_v36, 0.0  ;;  %v968_v34 = vld [vmem:[%s2595_s11] sm:$0xff] }
 0x2d9   :  { %v620_v41 = vmax.f32 %v615_v39, 0.0 }
 0x2db   :  { %690 = vmatprep.subr.mxu1 %v620_v41 }
 0x2dc   :  { %691 = vmatpush1.msra.mxu1 %v619_v42  ;;  %v788_v42 = vpop.permute.xlu0 %787 }
 0x2dd   :  { %692 = vmatprep.subr.mxu1 %v618_v43 }
 0x2de   :  { %693 = vmatpush1.msra.mxu1 %v617_v44 }
 0x2df   :  { %1610 = vmatmul.mubr.msk.f32.vlgmr.msra.gmra.mxu1 %vm649_vm2, %v621_v45 }
 0x2e0   :  { %732 = vmatprep.mubr.f32.mxu1 %v1956_v3 }
 0x2e3   :  { %1611 = vmatmul.mubr.msk.f32.gmra.mxu1 %vm649_vm2, %v622_v46 }
 0x2e4   :  { %738 = vmatprep.mubr.f32.mxu1 %v1956_v3 }
 0x2e7   :  { %1612 = vmatmul.mubr.msk.f32.gmra.mxu1 %vm649_vm2, %v623_v47 }
 0x2e8   :  { %744 = vmatprep.mubr.f32.mxu1 %v1956_v3 }
 0x2eb   :  { %1613 = vmatmul.mubr.msk.f32.gmra.mxu1 %vm649_vm2, %v624_v48 }
 0x2ec   :  { %903 = vmatprep.mubr.f32.mxu1 %v1956_v3 }
 0x39f   :  { %v728_v49 = vpop.f32.mrf.mxu1 }
 0x3a0   :  { %v729_v8 = vadd.f32 %v728_v49, %v632_v2  ;;  %v793_v49 = vpop.permute.xlu1 %792 }
 0x3a1   :  { %v730_v50 = vpop.f32.mrf.mxu1 }
 0x3a2   :  { %v731_v6 = vadd.f32 %v730_v50, %v632_v2  ;;  %v751_v13 = vmax.f32 %v729_v8, 0.0 }
 0x3a3   :  { %v734_v51 = vpop.f32.mrf.mxu1 }
 0x3a4   :  { %v735_v4 = vadd.f32 %v734_v51, %v637_v62  ;;  %v752_v12 = vmax.f32 %v731_v6, 0.0 }
 0x3a5   :  { %v736_v52 = vpop.f32.mrf.mxu1 }
 0x3a6   :  { %v737_v0 = vadd.f32 %v736_v52, %v637_v62  ;;  %v753_v11 = vmax.f32 %v735_v4, 0.0 }
 0x3a7   :  { %v740_v53 = vpop.f32.mrf.mxu1 }
 0x3a8   :  { %v741_v63 = vadd.f32 %v740_v53, %v642_v56  ;;  %v754_v10 = vmax.f32 %v737_v0, 0.0 }
 0x3a9   :  { %v742_v55 = vpop.f32.mrf.mxu1 }
 0x3aa   :  { %v743_v60 = vadd.f32 %v742_v55, %v642_v56  ;;  %v755_v9 = vmax.f32 %v741_v63, 0.0  ;;  %v798_v56 = vpop.permute.xlu0 %797  ;;  %v803_v63 = vpop.permute.xlu1 %802 }
 0x3ab   :  { %v746_v57 = vpop.f32.mrf.mxu1 }
 0x3ac   :  { %v747_v58 = vadd.f32 %v746_v57, %v647_v54  ;;  %v756_v7 = vmax.f32 %v743_v60, 0.0 }
 0x3ad   :  { %v748_v59 = vpop.f32.mrf.mxu1 }
 0x3ae   :  { %v749_v61 = vadd.f32 %v748_v59, %v647_v54  ;;  %v757_v5 = vmax.f32 %v747_v58, 0.0 }
 0x3b0   :  { %v758_v1 = vmax.f32 %v749_v61, 0.0 }
 0x3b2   :  { %863 = vmatprep.subr.mxu1 %v758_v1 }
 0x3b3   :  { %864 = vmatpush1.msra.mxu1 %v757_v5 }
 0x3b4   :  { %865 = vmatprep.subr.mxu1 %v756_v7  ;;  %v808_v7 = vpop.permute.xlu0 %807 }
 0x3b5   :  { %866 = vmatpush1.msra.mxu1 %v755_v9 }
 0x3b6   :  { %867 = vmatprep.subr.mxu1 %v754_v10 }
 0x3b7   :  { %868 = vmatpush1.msra.mxu1 %v753_v11 }
 0x3b8   :  { %869 = vmatprep.subr.mxu1 %v752_v12 }
 0x3b9   :  { %870 = vmatpush1.msra.mxu1 %v751_v13 }
 0x3ba   :  { %1614 = vmatmul.mubr.msk.f32.vlgmr.msra.gmra.mxu1 %vm132_vm0, %v759_v14  ;;  %1807 = vmatprep.subr.mxu1 %v975_v22  ;;  %v813_v14 = vpop.permute.xlu1 %812 }
 0x3bb   :  { %909 = vmatprep.mubr.f32.mxu1 %v1956_v3  ;;  %1815 = vmatpush3.msra.mxu1 %v975_v22 }
 0x3bc   :  { %1808 = vmatprep.subr.mxu1 %v974_v23 }
 0x3bd   :  { %1816 = vmatpush3.msra.mxu1 %v974_v23 }
 0x3be   :  { %1615 = vmatmul.mubr.msk.f32.gmra.mxu1 %vm132_vm0, %v760_v15 }
 0x3bf   :  { %915 = vmatprep.mubr.f32.mxu1 %v1956_v3 }
 0x3c2   :  { %1616 = vmatmul.mubr.msk.f32.gmra.mxu1 %vm132_vm0, %v761_v16 }
 0x3c3   :  { %921 = vmatprep.mubr.f32.mxu1 %v1956_v3 }
 0x3c6   :  { %1617 = vmatmul.mubr.msk.f32.gmra.mxu1 %vm132_vm0, %v762_v17 }
 0x3c7   :  { %927 = vmatprep.mubr.f32.mxu1 %v1956_v3 }
 0x3ca   :  { %1618 = vmatmul.mubr.msk.f32.gmra.mxu1 %vm132_vm0, %v763_v18 }
 0x3cb   :  { %933 = vmatprep.mubr.f32.mxu1 %v1956_v3 }
 0x3ce   :  { %1619 = vmatmul.mubr.msk.f32.gmra.mxu1 %vm132_vm0, %v764_v19 }
 0x3cf   :  { %939 = vmatprep.mubr.f32.mxu1 %v1956_v3 }
 0x3d2   :  { %1620 = vmatmul.mubr.msk.f32.gmra.mxu1 %vm132_vm0, %v765_v20 }
 0x3d3   :  { %945 = vmatprep.mubr.f32.mxu1 %v1956_v3  ;;  %v973_v3 = vld [vmem:[%s2595_s11 + $0x28] sm:$0xff] }
 0x3d4   :  { %1747 = vmatprep.subr.mxu0 %v973_v3  ;;  %1809 = vmatprep.subr.mxu1 %v973_v3 }
 0x3d5   :  { %1748 = vmatpush3.msra.mxu0 %v973_v3  ;;  %1817 = vmatpush3.msra.mxu1 %v973_v3 }
 0x3d6   :  { %1621 = vmatmul.mubr.msk.f32.gmra.mxu1 %vm132_vm0, %v766_v21  ;;  %1749 = vmatprep.subr.mxu0 %v972_v24 }
 0x3d7   :  { %1810 = vmatprep.subr.mxu1 %v972_v24  ;;  %1750 = vmatpush3.msra.mxu0 %v972_v24 }
 0x3d8   :  { %1818 = vmatpush3.msra.mxu1 %v972_v24  ;;  %1751 = vmatprep.subr.mxu0 %v971_v25 }
 0x3d9   :  { %1811 = vmatprep.subr.mxu1 %v971_v25  ;;  %1752 = vmatpush3.msra.mxu0 %v971_v25 }
 0x3da   :  { %1819 = vmatpush3.msra.mxu1 %v971_v25  ;;  %1753 = vmatprep.subr.mxu0 %v970_v26 }
 0x3db   :  { %1812 = vmatprep.subr.mxu1 %v970_v26  ;;  %1754 = vmatpush3.msra.mxu0 %v970_v26 }
 0x3dc   :  { %1820 = vmatpush3.msra.mxu1 %v970_v26  ;;  %1755 = vmatprep.subr.mxu0 %v969_v30 }
 0x3dd   :  { %1813 = vmatprep.subr.mxu1 %v969_v30  ;;  %1756 = vmatpush3.msra.mxu0 %v969_v30 }
 0x3de   :  { %1821 = vmatpush3.msra.mxu1 %v969_v30  ;;  %1757 = vmatprep.subr.mxu0 %v968_v34 }
 0x3df   :  { %1814 = vmatprep.subr.mxu1 %v968_v34  ;;  %1758 = vmatpush3.msra.mxu0 %v968_v34 }
 0x3e0   :  { %1822 = vmatpush3.msra.mxu1 %v968_v34 }
 0x47a   :  { %v905_v28 = vpop.f32.mrf.mxu1 }
 0x47b   :  { %v906_v29 = vadd.f32 %v905_v28, %v778_v27 }
 0x47c   :  { %v907_v31 = vpop.f32.mrf.mxu1 }
 0x47d   :  { %v952_v32 = vmax.f32 %v906_v29, 0.0  ;;  %v908_v33 = vadd.f32 %v907_v31, %v778_v27 }
 0x47e   :  { %v911_v36 = vpop.f32.mrf.mxu1 }
 0x47f   :  { %v953_v37 = vmax.f32 %v908_v33, 0.0  ;;  %v912_v38 = vadd.f32 %v911_v36, %v783_v35  ;;  %983 = vxpose.xlu0.b32.start [1/8] (short) %v952_v32, 128 }
 0x480   :  { %v913_v39 = vpop.f32.mrf.mxu1 }
 0x481   :  { %v954_v40 = vmax.f32 %v912_v38, 0.0  ;;  %v914_v41 = vadd.f32 %v913_v39, %v783_v35  ;;  %1015 = vxpose.xlu1.b32.start [1/8] (short) %v953_v37, 128 }
 0x482   :  { %v917_v43 = vpop.f32.mrf.mxu1 }
 0x483   :  { %v955_v44 = vmax.f32 %v914_v41, 0.0  ;;  %v918_v45 = vadd.f32 %v917_v43, %v788_v42  ;;  %984 = vxpose.xlu0.b32.cont [2/8] (short) %v954_v40, 128 }
 0x484   :  { %v919_v46 = vpop.f32.mrf.mxu1 }
 0x485   :  { %v956_v47 = vmax.f32 %v918_v45, 0.0  ;;  %v920_v48 = vadd.f32 %v919_v46, %v788_v42  ;;  %1016 = vxpose.xlu1.b32.cont [2/8] (short) %v955_v44, 128 }
 0x486   :  { %v923_v50 = vpop.f32.mrf.mxu1 }
 0x487   :  { %v957_v51 = vmax.f32 %v920_v48, 0.0  ;;  %v924_v52 = vadd.f32 %v923_v50, %v793_v49  ;;  %985 = vxpose.xlu0.b32.cont [3/8] (short) %v956_v47, 128 }
 0x488   :  { %v925_v53 = vpop.f32.mrf.mxu1 }
 0x489   :  { %v958_v54 = vmax.f32 %v924_v52, 0.0  ;;  %v926_v55 = vadd.f32 %v925_v53, %v793_v49  ;;  %1017 = vxpose.xlu1.b32.cont [3/8] (short) %v957_v51, 128  ;;  %v2422_v53 = vld [vmem:[%s2596_s12] ss:$0 sm:$0xff] }
 0x48a   :  { %v929_v57 = vpop.f32.mrf.mxu1 }
 0x48b   :  { %v959_v58 = vmax.f32 %v926_v55, 0.0  ;;  %v930_v59 = vadd.f32 %v929_v57, %v798_v56  ;;  %986 = vxpose.xlu0.b32.cont [4/8] (short) %v958_v54, 128 }
 0x48c   :  { %v931_v60 = vpop.f32.mrf.mxu1 }
 0x48d   :  { %v960_v61 = vmax.f32 %v930_v59, 0.0  ;;  %v932_v62 = vadd.f32 %v931_v60, %v798_v56  ;;  %1018 = vxpose.xlu1.b32.cont [4/8] (short) %v959_v58, 128 }
 0x48e   :  { %v935_v0 = vpop.f32.mrf.mxu1 }
 0x48f   :  { %v961_v1 = vmax.f32 %v932_v62, 0.0  ;;  %v936_v2 = vadd.f32 %v935_v0, %v803_v63  ;;  %987 = vxpose.xlu0.b32.cont [5/8] (short) %v960_v61, 128 }
 0x490   :  { %v937_v4 = vpop.f32.mrf.mxu1 }
 0x491   :  { %v962_v5 = vmax.f32 %v936_v2, 0.0  ;;  %v938_v6 = vadd.f32 %v937_v4, %v803_v63  ;;  %1019 = vxpose.xlu1.b32.cont [5/8] (short) %v961_v1, 128 }
 0x492   :  { %v941_v8 = vpop.f32.mrf.mxu1 }
 0x493   :  { %v963_v9 = vmax.f32 %v938_v6, 0.0  ;;  %v942_v10 = vadd.f32 %v941_v8, %v808_v7  ;;  %988 = vxpose.xlu0.b32.cont [6/8] (short) %v962_v5, 128 }
 0x494   :  { %v943_v11 = vpop.f32.mrf.mxu1 }
 0x495   :  { %v964_v12 = vmax.f32 %v942_v10, 0.0  ;;  %v944_v13 = vadd.f32 %v943_v11, %v808_v7  ;;  %1020 = vxpose.xlu1.b32.cont [6/8] (short) %v963_v9, 128 }
 0x496   :  { %v947_v15 = vpop.f32.mrf.mxu1 }
 0x497   :  { %v965_v16 = vmax.f32 %v944_v13, 0.0  ;;  %v948_v17 = vadd.f32 %v947_v15, %v813_v14  ;;  %989 = vxpose.xlu0.b32.cont [7/8] (short) %v964_v12, 128 }
 0x498   :  { %v949_v18 = vpop.f32.mrf.mxu1 }
 0x499   :  { %v966_v19 = vmax.f32 %v948_v17, 0.0  ;;  %v950_v20 = vadd.f32 %v949_v18, %v813_v14  ;;  %1021 = vxpose.xlu1.b32.cont [7/8] (short) %v965_v16, 128 }
 0x49b   :  { %v967_v21 = vmax.f32 %v950_v20, 0.0  ;;  %990 = vxpose.xlu0.b32.end [8/8] (short) %v966_v19, 128 }
 0x49d   :  { %1022 = vxpose.xlu1.b32.end [8/8] (short) %v967_v21, 128 }
 0x4fb   :  { %v999_v22 = vpop.trf.xlu0 }
 0x4fc   :  { %1759 = vmatprep.mubr.msk.f32.mxu0 %vm410_vm1, %v999_v22 }
 0x4fd   :  { %v1031_v23 = vpop.trf.xlu1 }
 0x4ff   :  { %v1000_v3 = vpop.trf.xlu0 }
 0x500   :  { %1760 = vmatmul.mubr.msk.f32.vlgmr.msra.gmra.mxu0 %vm410_vm1, %v1000_v3 }
 0x501   :  { %v1032_v24 = vpop.trf.xlu1 }
 0x503   :  { %v1001_v25 = vpop.trf.xlu0 }
 0x504   :  { %1762 = vmatprep.mubr.msk.f32.mxu0 %vm410_vm1, %v1001_v25 }
 0x505   :  { %v1033_v27 = vpop.trf.xlu1 }
 0x507   :  { %v1002_v26 = vpop.trf.xlu0 }
 0x508   :  { %1763 = vmatmul.mubr.msk.f32.gmra.mxu0 %vm410_vm1, %v1002_v26 }
 0x509   :  { %v1034_v29 = vpop.trf.xlu1 }
 0x50b   :  { %v1003_v28 = vpop.trf.xlu0 }
 0x50c   :  { %1765 = vmatprep.mubr.msk.f32.mxu0 %vm410_vm1, %v1003_v28 }
 0x50d   :  { %v1035_v32 = vpop.trf.xlu1 }
 0x50f   :  { %v1004_v30 = vpop.trf.xlu0 }
 0x510   :  { %1766 = vmatmul.mubr.msk.f32.gmra.mxu0 %vm410_vm1, %v1004_v30 }
 0x511   :  { %v1036_v34 = vpop.trf.xlu1 }
 0x513   :  { %v1005_v31 = vpop.trf.xlu0 }
 0x514   :  { %1768 = vmatprep.mubr.msk.f32.mxu0 %vm410_vm1, %v1005_v31 }
 0x515   :  { %v1037_v37 = vpop.trf.xlu1 }
 0x517   :  { %v1006_v33 = vpop.trf.xlu0 }
 0x518   :  { %1769 = vmatmul.mubr.msk.f32.gmra.mxu0 %vm410_vm1, %v1006_v33 }
 0x519   :  { %v1038_v39 = vpop.trf.xlu1 }
 0x51b   :  { %v1007_v35 = vpop.trf.xlu0 }
 0x51c   :  { %1771 = vmatprep.mubr.msk.f32.mxu0 %vm410_vm1, %v1007_v35 }
 0x51d   :  { %v1039_v42 = vpop.trf.xlu1 }
 0x51f   :  { %v1008_v36 = vpop.trf.xlu0 }
 0x520   :  { %1772 = vmatmul.mubr.msk.f32.gmra.mxu0 %vm410_vm1, %v1008_v36 }
 0x521   :  { %v1040_v44 = vpop.trf.xlu1 }
 0x523   :  { %v1009_v38 = vpop.trf.xlu0 }
 0x524   :  { %1774 = vmatprep.mubr.msk.f32.mxu0 %vm410_vm1, %v1009_v38 }
 0x525   :  { %v1041_v47 = vpop.trf.xlu1 }
 0x527   :  { %v1010_v40 = vpop.trf.xlu0 }
 0x528   :  { %1775 = vmatmul.mubr.msk.f32.gmra.mxu0 %vm410_vm1, %v1010_v40 }
 0x529   :  { %v1042_v48 = vpop.trf.xlu1 }
 0x52b   :  { %v1011_v41 = vpop.trf.xlu0 }
 0x52c   :  { %1777 = vmatprep.mubr.msk.f32.mxu0 %vm410_vm1, %v1011_v41 }
 0x52d   :  { %v1043_v49 = vpop.trf.xlu1 }
 0x52f   :  { %v1012_v43 = vpop.trf.xlu0 }
 0x530   :  { %1778 = vmatmul.mubr.msk.f32.gmra.mxu0 %vm410_vm1, %v1012_v43 }
 0x531   :  { %v1044_v50 = vpop.trf.xlu1 }
 0x533   :  { %v1013_v45 = vpop.trf.xlu0 }
 0x534   :  { %1780 = vmatprep.mubr.msk.f32.mxu1 %vm410_vm1, %v1013_v45 }
 0x535   :  { %v1045_v51 = vpop.trf.xlu1 }
 0x537   :  { %v1014_v46 = vpop.trf.xlu0 }
 0x538   :  { %1781 = vmatmul.mubr.msk.f32.vlgmr.msra.gmra.mxu1 %vm410_vm1, %v1014_v46 }
 0x539   :  { %1783 = vmatprep.mubr.msk.f32.mxu1 %vm410_vm1, %v1031_v23  ;;  %v1046_v52 = vpop.trf.xlu1 }
 0x53c   :  { %1784 = vmatmul.mubr.msk.f32.gmra.mxu1 %vm410_vm1, %v1032_v24 }
 0x53d   :  { %1786 = vmatprep.mubr.msk.f32.mxu1 %vm410_vm1, %v1033_v27 }
 0x540   :  { %1787 = vmatmul.mubr.msk.f32.gmra.mxu1 %vm410_vm1, %v1034_v29 }
 0x541   :  { %1789 = vmatprep.mubr.msk.f32.mxu1 %vm410_vm1, %v1035_v32 }
 0x544   :  { %1790 = vmatmul.mubr.msk.f32.gmra.mxu1 %vm410_vm1, %v1036_v34 }
 0x545   :  { %1792 = vmatprep.mubr.msk.f32.mxu1 %vm410_vm1, %v1037_v37 }
 0x548   :  { %1793 = vmatmul.mubr.msk.f32.gmra.mxu1 %vm410_vm1, %v1038_v39 }
 0x549   :  { %1795 = vmatprep.mubr.msk.f32.mxu1 %vm410_vm1, %v1039_v42 }
 0x54c   :  { %1796 = vmatmul.mubr.msk.f32.gmra.mxu1 %vm410_vm1, %v1040_v44 }
 0x54d   :  { %1798 = vmatprep.mubr.msk.f32.mxu1 %vm410_vm1, %v1041_v47 }
 0x550   :  { %1799 = vmatmul.mubr.msk.f32.gmra.mxu1 %vm410_vm1, %v1042_v48 }
 0x551   :  { %1801 = vmatprep.mubr.msk.f32.mxu1 %vm410_vm1, %v1043_v49 }
 0x554   :  { %1802 = vmatmul.mubr.msk.f32.gmra.mxu1 %vm410_vm1, %v1044_v50 }
 0x555   :  { %1804 = vmatprep.mubr.msk.f32.mxu1 %vm410_vm1, %v1045_v51 }
 0x558   :  { %1805 = vmatmul.mubr.msk.f32.gmra.mxu1 %vm410_vm1, %v1046_v52 }
 0x5c0   :  { %v1761_v54 = vpop.f32.mrf.mxu0 }
 0x5c1   :  { %v1215_v55 = vadd.f32 %v1761_v54, %v2422_v53 }
 0x5c2   :  { %v1209_v56 = vpop.f32.mrf.mxu0 }
 0x5c3   :  { %v1369_v57 = vsub.f32 0.0, %v1215_v55  ;;  %v1210_v58 = vadd.f32 %v2422_v53, %v1209_v56 }
 0x5c5   :  { %v1402_v59 = vmul.f32 1.442695, %v1369_v57  ;;  %v1368_v60 = vsub.f32 0.0, %v1210_v58 }
 0x5c7   :  { %1827 = vpow2.f32 %v1402_v59  ;;  %v1400_v61 = vmul.f32 1.442695, %v1368_v60 }
 0x5c8   :  { %v1764_v62 = vpop.f32.mrf.mxu0 }
 0x5c9   :  { %1829 = vpow2.f32 %v1400_v61  ;;  %v1225_v63 = vadd.f32 %v1764_v62, %v2422_v53 }
 0x5ca   :  { %v1219_v0 = vpop.f32.mrf.mxu0 }
 0x5cb   :  { %v1371_v1 = vsub.f32 0.0, %v1225_v63  ;;  %v1220_v2 = vadd.f32 %v2422_v53, %v1219_v0 }
 0x5cd   :  { %v1406_v4 = vmul.f32 1.442695, %v1371_v1  ;;  %v1370_v5 = vsub.f32 0.0, %v1220_v2 }
 0x5cf   :  { %1831 = vpow2.f32 %v1406_v4  ;;  %v1404_v6 = vmul.f32 1.442695, %v1370_v5 }
 0x5d0   :  { %v1767_v7 = vpop.f32.mrf.mxu0 }
 0x5d1   :  { %1833 = vpow2.f32 %v1404_v6  ;;  %v1235_v8 = vadd.f32 %v1767_v7, %v2422_v53 }
 0x5d2   :  { %v1229_v9 = vpop.f32.mrf.mxu0 }
 0x5d3   :  { %v1373_v10 = vsub.f32 0.0, %v1235_v8  ;;  %v1230_v11 = vadd.f32 %v2422_v53, %v1229_v9 }
 0x5d4   :  { %v1828_v12 = vpop.eup %1827 }
 0x5d5   :  { %v1465_v13 = vadd.f32 1.0, %v1828_v12  ;;  %v1410_v14 = vmul.f32 1.442695, %v1373_v10  ;;  %v1372_v15 = vsub.f32 0.0, %v1230_v11 }
 0x5d6   :  { %v1830_v16 = vpop.eup %1829 }
 0x5d7   :  { %1835 = vrcp.f32 %v1465_v13  ;;  %v1464_v17 = vadd.f32 1.0, %v1830_v16  ;;  %v1408_v18 = vmul.f32 1.442695, %v1372_v15 }
 0x5d8   :  { %1837 = vpow2.f32 %v1410_v14  ;;  %v1770_v19 = vpop.f32.mrf.mxu0 }
 0x5d9   :  { %1839 = vrcp.f32 %v1464_v17  ;;  %v1245_v20 = vadd.f32 %v1770_v19, %v2422_v53 }
 0x5da   :  { %1841 = vpow2.f32 %v1408_v18  ;;  %v1239_v21 = vpop.f32.mrf.mxu0 }
 0x5db   :  { %v1375_v22 = vsub.f32 0.0, %v1245_v20  ;;  %v1240_v23 = vadd.f32 %v2422_v53, %v1239_v21 }
 0x5dc   :  { %v1832_v3 = vpop.eup %1831 }
 0x5dd   :  { %v1467_v24 = vadd.f32 1.0, %v1832_v3  ;;  %v1414_v25 = vmul.f32 1.442695, %v1375_v22  ;;  %v1374_v26 = vsub.f32 0.0, %v1240_v23 }
 0x5de   :  { %v1834_v27 = vpop.eup %1833 }
 0x5df   :  { %1843 = vrcp.f32 %v1467_v24  ;;  %v1466_v28 = vadd.f32 1.0, %v1834_v27  ;;  %v1412_v29 = vmul.f32 1.442695, %v1374_v26 }
 0x5e0   :  { %1845 = vpow2.f32 %v1414_v25  ;;  %v1773_v30 = vpop.f32.mrf.mxu0 }
 0x5e1   :  { %1847 = vrcp.f32 %v1466_v28  ;;  %v1255_v31 = vadd.f32 %v1773_v30, %v2422_v53 }
 0x5e2   :  { %1849 = vpow2.f32 %v1412_v29  ;;  %v1249_v32 = vpop.f32.mrf.mxu0 }
 0x5e3   :  { %v1377_v33 = vsub.f32 0.0, %v1255_v31  ;;  %v1250_v34 = vadd.f32 %v2422_v53, %v1249_v32 }
 0x5e4   :  { %v1836_v35 = vpop.eup %1835 }
 0x5e5   :  { %v1838_v36 = vpop.eup %1837  ;;  %1529 = vst.msk [vmem:[%s2597_s13 + $0x8] sm:$0xff] %vm132_vm0, %v1836_v35  ;;  %v1418_v37 = vmul.f32 1.442695, %v1377_v33  ;;  %v1376_v38 = vsub.f32 0.0, %v1250_v34 }
 0x5e6   :  { %v1840_v39 = vpop.eup %1839  ;;  %v1469_v40 = vadd.f32 1.0, %v1838_v36 }
 0x5e7   :  { %v1842_v41 = vpop.eup %1841  ;;  %1528 = vst.msk [vmem:[%s2597_s13] sm:$0xff] %vm132_vm0, %v1840_v39  ;;  %1851 = vpow2.f32 %v1418_v37  ;;  %v1416_v42 = vmul.f32 1.442695, %v1376_v38 }
 0x5e8   :  { %1853 = vrcp.f32 %v1469_v40  ;;  %v1468_v43 = vadd.f32 1.0, %v1842_v41  ;;  %v1776_v44 = vpop.f32.mrf.mxu0 }
 0x5e9   :  { %1855 = vpow2.f32 %v1416_v42  ;;  %v1265_v45 = vadd.f32 %v1776_v44, %v2422_v53 }
 0x5ea   :  { %1857 = vrcp.f32 %v1468_v43  ;;  %v1259_v46 = vpop.f32.mrf.mxu0 }
 0x5eb   :  { %v1379_v47 = vsub.f32 0.0, %v1265_v45  ;;  %v1260_v48 = vadd.f32 %v2422_v53, %v1259_v46 }
 0x5ec   :  { %v1844_v49 = vpop.eup %1843 }
 0x5ed   :  { %v1846_v50 = vpop.eup %1845  ;;  %1531 = vst.msk [vmem:[%s2597_s13 + $0x18] sm:$0xff] %vm132_vm0, %v1844_v49  ;;  %v1422_v51 = vmul.f32 1.442695, %v1379_v47  ;;  %v1378_v52 = vsub.f32 0.0, %v1260_v48 }
 0x5ee   :  { %v1848_v54 = vpop.eup %1847  ;;  %v1471_v55 = vadd.f32 1.0, %v1846_v50 }
 0x5ef   :  { %v1850_v56 = vpop.eup %1849  ;;  %1530 = vst.msk [vmem:[%s2597_s13 + $0x10] sm:$0xff] %vm132_vm0, %v1848_v54  ;;  %1859 = vpow2.f32 %v1422_v51  ;;  %v1420_v57 = vmul.f32 1.442695, %v1378_v52 }
 0x5f0   :  { %1861 = vrcp.f32 %v1471_v55  ;;  %v1470_v58 = vadd.f32 1.0, %v1850_v56  ;;  %v1779_v59 = vpop.f32.mrf.mxu0 }
 0x5f1   :  { %1863 = vpow2.f32 %v1420_v57  ;;  %v1275_v60 = vadd.f32 %v1779_v59, %v2422_v53 }
 0x5f2   :  { %1865 = vrcp.f32 %v1470_v58  ;;  %v1269_v61 = vpop.f32.mrf.mxu0 }
 0x5f3   :  { %v1381_v62 = vsub.f32 0.0, %v1275_v60  ;;  %v1270_v63 = vadd.f32 %v2422_v53, %v1269_v61 }
 0x5f4   :  { %v1852_v0 = vpop.eup %1851 }
 0x5f5   :  { %v1854_v1 = vpop.eup %1853  ;;  %v1473_v2 = vadd.f32 1.0, %v1852_v0  ;;  %v1426_v4 = vmul.f32 1.442695, %v1381_v62  ;;  %v1380_v5 = vsub.f32 0.0, %v1270_v63 }
 0x5f6   :  { %v1856_v6 = vpop.eup %1855  ;;  %1533 = vst.msk [vmem:[%s2597_s13 + $0x28] sm:$0xff] %vm132_vm0, %v1854_v1 }
 0x5f7   :  { %v1858_v7 = vpop.eup %1857  ;;  %1867 = vrcp.f32 %v1473_v2  ;;  %v1472_v8 = vadd.f32 1.0, %v1856_v6  ;;  %v1424_v9 = vmul.f32 1.442695, %v1380_v5 }
 0x5f8   :  { %1532 = vst.msk [vmem:[%s2597_s13 + $0x20] sm:$0xff] %vm132_vm0, %v1858_v7  ;;  %1869 = vpow2.f32 %v1426_v4  ;;  %v1782_v10 = vpop.f32.mrf.mxu1 }
 0x5f9   :  { %1871 = vrcp.f32 %v1472_v8  ;;  %v1285_v11 = vadd.f32 %v1782_v10, %v2422_v53 }
 0x5fa   :  { %1873 = vpow2.f32 %v1424_v9  ;;  %v1279_v12 = vpop.f32.mrf.mxu1 }
 0x5fb   :  { %v1383_v13 = vsub.f32 0.0, %v1285_v11  ;;  %v1280_v14 = vadd.f32 %v2422_v53, %v1279_v12 }
 0x5fc   :  { %v1860_v15 = vpop.eup %1859  ;;  %v1785_v16 = vpop.f32.mrf.mxu1 }
 0x5fd   :  { %v1862_v17 = vpop.eup %1861  ;;  %v1475_v18 = vadd.f32 1.0, %v1860_v15  ;;  %v1430_v19 = vmul.f32 1.442695, %v1383_v13  ;;  %v1382_v20 = vsub.f32 0.0, %v1280_v14  ;;  %v1295_v21 = vadd.f32 %v1785_v16, %v2422_v53 }
 0x5fe   :  { %v1864_v22 = vpop.eup %1863  ;;  %1535 = vst.msk [vmem:[%s2597_s13 + $0x38] sm:$0xff] %vm132_vm0, %v1862_v17  ;;  %v1289_v23 = vpop.f32.mrf.mxu1 }
 0x5ff   :  { %v1866_v3 = vpop.eup %1865  ;;  %1875 = vrcp.f32 %v1475_v18  ;;  %v1474_v24 = vadd.f32 1.0, %v1864_v22  ;;  %v1428_v25 = vmul.f32 1.442695, %v1382_v20  ;;  %v1385_v26 = vsub.f32 0.0, %v1295_v21 }
 0x600   :  { %1534 = vst.msk [vmem:[%s2597_s13 + $0x30] sm:$0xff] %vm132_vm0, %v1866_v3  ;;  %1877 = vpow2.f32 %v1430_v19  ;;  %v1290_v27 = vadd.f32 %v2422_v53, %v1289_v23  ;;  %v1788_v28 = vpop.f32.mrf.mxu1 }
 0x601   :  { %1879 = vrcp.f32 %v1474_v24  ;;  %v1434_v29 = vmul.f32 1.442695, %v1385_v26  ;;  %v1305_v30 = vadd.f32 %v1788_v28, %v2422_v53 }
 0x602   :  { %1881 = vpow2.f32 %v1428_v25  ;;  %v1384_v31 = vsub.f32 0.0, %v1290_v27  ;;  %v1299_v32 = vpop.f32.mrf.mxu1 }
 0x603   :  { %1883 = vpow2.f32 %v1434_v29  ;;  %v1387_v33 = vsub.f32 0.0, %v1305_v30  ;;  %v1300_v34 = vadd.f32 %v2422_v53, %v1299_v32 }
 0x604   :  { %v1868_v35 = vpop.eup %1867  ;;  %v1432_v36 = vmul.f32 1.442695, %v1384_v31  ;;  %v1791_v37 = vpop.f32.mrf.mxu1 }
 0x605   :  { %v1870_v38 = vpop.eup %1869  ;;  %1537 = vst.msk [vmem:[%s2597_s13 + $0x48] sm:$0xff] %vm132_vm0, %v1868_v35  ;;  %v1438_v39 = vmul.f32 1.442695, %v1387_v33  ;;  %v1386_v40 = vsub.f32 0.0, %v1300_v34  ;;  %v1315_v41 = vadd.f32 %v1791_v37, %v2422_v53 }
 0x606   :  { %v1872_v42 = vpop.eup %1871  ;;  %v1477_v43 = vadd.f32 1.0, %v1870_v38  ;;  %1885 = vpow2.f32 %v1432_v36  ;;  %v1309_v44 = vpop.f32.mrf.mxu1 }
 0x607   :  { %v1874_v45 = vpop.eup %1873  ;;  %1536 = vst.msk [vmem:[%s2597_s13 + $0x40] sm:$0xff] %vm132_vm0, %v1872_v42  ;;  %1887 = vpow2.f32 %v1438_v39  ;;  %v1436_v46 = vmul.f32 1.442695, %v1386_v40  ;;  %v1389_v47 = vsub.f32 0.0, %v1315_v41  ;;  %v1310_v48 = vadd.f32 %v2422_v53, %v1309_v44 }
 0x608   :  { %1889 = vrcp.f32 %v1477_v43  ;;  %v1476_v49 = vadd.f32 1.0, %v1874_v45  ;;  %v1794_v50 = vpop.f32.mrf.mxu1 }
 0x609   :  { %1891 = vpow2.f32 %v1436_v46  ;;  %v1442_v51 = vmul.f32 1.442695, %v1389_v47  ;;  %v1388_v52 = vsub.f32 0.0, %v1310_v48  ;;  %v1325_v54 = vadd.f32 %v1794_v50, %v2422_v53 }
 0x60a   :  { %1893 = vrcp.f32 %v1476_v49  ;;  %v1319_v55 = vpop.f32.mrf.mxu1 }
 0x60b   :  { %1895 = vpow2.f32 %v1442_v51  ;;  %v1440_v56 = vmul.f32 1.442695, %v1388_v52  ;;  %v1391_v57 = vsub.f32 0.0, %v1325_v54  ;;  %v1320_v58 = vadd.f32 %v2422_v53, %v1319_v55 }
 0x60c   :  { %v1876_v59 = vpop.eup %1875  ;;  %v1797_v60 = vpop.f32.mrf.mxu1 }
 0x60d   :  { %v1878_v61 = vpop.eup %1877  ;;  %1539 = vst.msk [vmem:[%s2597_s13 + $0x58] sm:$0xff] %vm132_vm0, %v1876_v59  ;;  %1897 = vpow2.f32 %v1440_v56  ;;  %v1446_v62 = vmul.f32 1.442695, %v1391_v57  ;;  %v1390_v63 = vsub.f32 0.0, %v1320_v58  ;;  %v1335_v0 = vadd.f32 %v1797_v60, %v2422_v53 }
 0x60e   :  { %v1880_v1 = vpop.eup %1879  ;;  %v1479_v2 = vadd.f32 1.0, %v1878_v61  ;;  %v1329_v4 = vpop.f32.mrf.mxu1 }
 0x60f   :  { %v1882_v5 = vpop.eup %1881  ;;  %1538 = vst.msk [vmem:[%s2597_s13 + $0x50] sm:$0xff] %vm132_vm0, %v1880_v1  ;;  %1899 = vpow2.f32 %v1446_v62  ;;  %v1444_v6 = vmul.f32 1.442695, %v1390_v63  ;;  %v1393_v7 = vsub.f32 0.0, %v1335_v0  ;;  %v1330_v8 = vadd.f32 %v2422_v53, %v1329_v4 }
 0x610   :  { %v1884_v9 = vpop.eup %1883  ;;  %1901 = vrcp.f32 %v1479_v2  ;;  %v1478_v10 = vadd.f32 1.0, %v1882_v5  ;;  %v1800_v11 = vpop.f32.mrf.mxu1 }
 0x611   :  { %v1481_v12 = vadd.f32 1.0, %v1884_v9  ;;  %1903 = vpow2.f32 %v1444_v6  ;;  %v1450_v13 = vmul.f32 1.442695, %v1393_v7  ;;  %v1392_v14 = vsub.f32 0.0, %v1330_v8 }
 0x612   :  { %1905 = vrcp.f32 %v1478_v10  ;;  %v1345_v15 = vadd.f32 %v1800_v11, %v2422_v53  ;;  %v1339_v16 = vpop.f32.mrf.mxu1 }
 0x613   :  { %v1886_v17 = vpop.eup %1885  ;;  %1907 = vrcp.f32 %v1481_v12  ;;  %v1448_v18 = vmul.f32 1.442695, %v1392_v14  ;;  %v1340_v19 = vadd.f32 %v2422_v53, %v1339_v16 }
 0x614   :  { %v1888_v20 = vpop.eup %1887  ;;  %v1480_v21 = vadd.f32 1.0, %v1886_v17  ;;  %1909 = vpow2.f32 %v1450_v13  ;;  %v1395_v22 = vsub.f32 0.0, %v1345_v15  ;;  %v1803_v23 = vpop.f32.mrf.mxu1 }
 0x615   :  { %v1890_v3 = vpop.eup %1889  ;;  %v1483_v24 = vadd.f32 1.0, %v1888_v20  ;;  %1911 = vpow2.f32 %v1448_v18  ;;  %v1394_v25 = vsub.f32 0.0, %v1340_v19  ;;  %v1355_v26 = vadd.f32 %v1803_v23, %v2422_v53 }
 0x616   :  { %v1892_v27 = vpop.eup %1891  ;;  %1541 = vst.msk [vmem:[%s2597_s13 + $0x68] sm:$0xff] %vm132_vm0, %v1890_v3  ;;  %1913 = vrcp.f32 %v1480_v21  ;;  %v1454_v28 = vmul.f32 1.442695, %v1395_v22  ;;  %v1349_v29 = vpop.f32.mrf.mxu1 }
 0x617   :  { %v1894_v30 = vpop.eup %1893  ;;  %1915 = vrcp.f32 %v1483_v24  ;;  %v1482_v31 = vadd.f32 1.0, %v1892_v27  ;;  %v1452_v32 = vmul.f32 1.442695, %v1394_v25  ;;  %v1397_v33 = vsub.f32 0.0, %v1355_v26 }
 0x618   :  { %v1896_v34 = vpop.eup %1895  ;;  %1540 = vst.msk [vmem:[%s2597_s13 + $0x60] sm:$0xff] %vm132_vm0, %v1894_v30  ;;  %1917 = vpow2.f32 %v1454_v28  ;;  %v1350_v35 = vadd.f32 %v2422_v53, %v1349_v29  ;;  %v1806_v36 = vpop.f32.mrf.mxu1 }
 0x619   :  { %1919 = vrcp.f32 %v1482_v31  ;;  %v1485_v37 = vadd.f32 1.0, %v1896_v34  ;;  %v1458_v38 = vmul.f32 1.442695, %v1397_v33  ;;  %v1365_v39 = vadd.f32 %v1806_v36, %v2422_v53 }
 0x61a   :  { %v1898_v40 = vpop.eup %1897  ;;  %1921 = vpow2.f32 %v1452_v32  ;;  %v1396_v41 = vsub.f32 0.0, %v1350_v35  ;;  %v1359_v42 = vpop.f32.mrf.mxu1 }
 0x61b   :  { %1923 = vrcp.f32 %v1485_v37  ;;  %v1484_v43 = vadd.f32 1.0, %v1898_v40  ;;  %v1399_v44 = vsub.f32 0.0, %v1365_v39  ;;  %v1360_v45 = vadd.f32 %v2422_v53, %v1359_v42 }
 0x61c   :  { %v1900_v46 = vpop.eup %1899  ;;  %1925 = vpow2.f32 %v1458_v38  ;;  %v1456_v47 = vmul.f32 1.442695, %v1396_v41 }
 0x61d   :  { %v1902_v48 = vpop.eup %1901  ;;  %1927 = vrcp.f32 %v1484_v43  ;;  %v1487_v49 = vadd.f32 1.0, %v1900_v46  ;;  %v1462_v50 = vmul.f32 1.442695, %v1399_v44  ;;  %v1398_v51 = vsub.f32 0.0, %v1360_v45 }
 0x61e   :  { %v1904_v52 = vpop.eup %1903  ;;  %1543 = vst.msk [vmem:[%s2597_s13 + $0x78] sm:$0xff] %vm132_vm0, %v1902_v48  ;;  %1929 = vpow2.f32 %v1456_v47 }
 0x61f   :  { %v1906_v54 = vpop.eup %1905  ;;  %1931 = vrcp.f32 %v1487_v49  ;;  %v1486_v55 = vadd.f32 1.0, %v1904_v52  ;;  %v1460_v56 = vmul.f32 1.442695, %v1398_v51 }
 0x620   :  { %v1908_v53 = vpop.eup %1907  ;;  %1542 = vst.msk [vmem:[%s2597_s13 + $0x70] sm:$0xff] %vm132_vm0, %v1906_v54  ;;  %1933 = vpow2.f32 %v1462_v50 }
 0x621   :  { %v1910_v57 = vpop.eup %1909  ;;  %1545 = vst.msk [vmem:[%s2597_s13 + $0x88] sm:$0xff] %vm132_vm0, %v1908_v53  ;;  %1935 = vrcp.f32 %v1486_v55 }
 0x622   :  { %v1912_v58 = vpop.eup %1911  ;;  %v1489_v59 = vadd.f32 1.0, %v1910_v57  ;;  %1937 = vpow2.f32 %v1460_v56 }
 0x623   :  { %v1914_v60 = vpop.eup %1913  ;;  %v1488_v61 = vadd.f32 1.0, %v1912_v58 }
 0x624   :  { %v1916_v62 = vpop.eup %1915  ;;  %1544 = vst.msk [vmem:[%s2597_s13 + $0x80] sm:$0xff] %vm132_vm0, %v1914_v60  ;;  %1939 = vrcp.f32 %v1489_v59 }
 0x625   :  { %v1918_v63 = vpop.eup %1917  ;;  %1547 = vst.msk [vmem:[%s2597_s13 + $0x98] sm:$0xff] %vm132_vm0, %v1916_v62  ;;  %1941 = vrcp.f32 %v1488_v61 }
 0x626   :  { %v1920_v0 = vpop.eup %1919  ;;  %v1491_v1 = vadd.f32 1.0, %v1918_v63 }
 0x627   :  { %v1922_v2 = vpop.eup %1921  ;;  %1546 = vst.msk [vmem:[%s2597_s13 + $0x90] sm:$0xff] %vm132_vm0, %v1920_v0 }
 0x628   :  { %v1924_v4 = vpop.eup %1923  ;;  %1943 = vrcp.f32 %v1491_v1  ;;  %v1490_v5 = vadd.f32 1.0, %v1922_v2 }
 0x629   :  { %v1926_v6 = vpop.eup %1925  ;;  %1549 = vst.msk [vmem:[%s2597_s13 + $0xa8] sm:$0xff] %vm132_vm0, %v1924_v4 }
 0x62a   :  { %v1928_v7 = vpop.eup %1927  ;;  %1945 = vrcp.f32 %v1490_v5  ;;  %v1493_v8 = vadd.f32 1.0, %v1926_v6 }
 0x62b   :  { %v1930_v9 = vpop.eup %1929  ;;  %1548 = vst.msk [vmem:[%s2597_s13 + $0xa0] sm:$0xff] %vm132_vm0, %v1928_v7 }
 0x62c   :  { %v1932_v10 = vpop.eup %1931  ;;  %1947 = vrcp.f32 %v1493_v8  ;;  %v1492_v11 = vadd.f32 1.0, %v1930_v9 }
 0x62d   :  { %v1934_v12 = vpop.eup %1933  ;;  %1551 = vst.msk [vmem:[%s2597_s13 + $0xb8] sm:$0xff] %vm132_vm0, %v1932_v10 }
 0x62e   :  { %v1936_v13 = vpop.eup %1935  ;;  %1949 = vrcp.f32 %v1492_v11  ;;  %v1495_v14 = vadd.f32 1.0, %v1934_v12 }
 0x62f   :  { %v1938_v15 = vpop.eup %1937  ;;  %1550 = vst.msk [vmem:[%s2597_s13 + $0xb0] sm:$0xff] %vm132_vm0, %v1936_v13 }
 0x630   :  { %1951 = vrcp.f32 %v1495_v14  ;;  %v1494_v16 = vadd.f32 1.0, %v1938_v15 }
 0x631   :  { %v1940_v17 = vpop.eup %1939 }
 0x632   :  { %v1942_v18 = vpop.eup %1941  ;;  %1553 = vst.msk [vmem:[%s2597_s13 + $0xc8] sm:$0xff] %vm132_vm0, %v1940_v17  ;;  %1953 = vrcp.f32 %v1494_v16 }
 0x633   :  { %1552 = vst.msk [vmem:[%s2597_s13 + $0xc0] sm:$0xff] %vm132_vm0, %v1942_v18 }
 0x635   :  { %v1944_v19 = vpop.eup %1943 }
 0x636   :  { %1555 = vst.msk [vmem:[%s2597_s13 + $0xd8] sm:$0xff] %vm132_vm0, %v1944_v19 }
 0x637   :  { %v1946_v20 = vpop.eup %1945 }
 0x638   :  { %1554 = vst.msk [vmem:[%s2597_s13 + $0xd0] sm:$0xff] %vm132_vm0, %v1946_v20 }
 0x639   :  { %v1948_v21 = vpop.eup %1947 }
 0x63a   :  { %1557 = vst.msk [vmem:[%s2597_s13 + $0xe8] sm:$0xff] %vm132_vm0, %v1948_v21 }
 0x63b   :  { %v1950_v22 = vpop.eup %1949 }
 0x63c   :  { %1556 = vst.msk [vmem:[%s2597_s13 + $0xe0] sm:$0xff] %vm132_vm0, %v1950_v22 }
 0x63d   :  { %v1952_v23 = vpop.eup %1951 }
 0x63e   :  { %1559 = vst.msk [vmem:[%s2597_s13 + $0xf8] sm:$0xff] %vm132_vm0, %v1952_v23 }
 0x63f   :  { %v1954_v3 = vpop.eup %1953 }
 0x640   :  { %1558 = vst.msk [vmem:[%s2597_s13 + $0xf0] sm:$0xff] %vm132_vm0, %v1954_v3 }

</bundles_post_ra>
